<compile_context>
chip_gen: v6e
topology: v6e:2x2x1
jax: 0.10.0
libtpu: 0.0.40
codegen_flags: <defaults>
</compile_context>

<pallas_src>
import functools

import numpy as np
import jax
import jax.numpy as jnp
from jax import lax
from jax.experimental import pallas as pl
from jax.experimental.pallas import tpu as pltpu


# ----------------------------------------------------------------------------
# Pallas kernel (one packed group of images per grid step)
# ----------------------------------------------------------------------------
def _upsample_res_kernel(W, C, Co, alphas_ref, x_ref, w1_ref, taps_ref,
                         wcomb_ref, s0_ref, coef_ref, o_ref):
    """
    W          : image width (python int)
    C, Co      : PACKED channel counts (pack*C_in, pack*C_in//2)
    alphas_ref : SMEM (2,)             [a1, a2] PReLU slopes
    x_ref      : (1, C, HW)            packed input group, HW on lanes
    w1_ref     : (C, C)                kron(I_pack, top 1x1 conv)
    taps_ref   : (4C, 4C)              K-fused, parity-stacked ConvTranspose taps
    wcomb_ref  : (Co, 2C)              [kron(I,w3) | kron(I,wb)] per-parity combine
    s0_ref     : (HW, 4HW)             0/1 spread operator  (i*W+j) -> (4W*i + 2j)
    coef_ref   : (8, HW)               per-lane masks / lerp coefficients
    o_ref      : (1, Co, 4HW)          final-layout output: lane (2i+dy)*2W+2j+dx
    """
    a1 = alphas_ref[0]
    a2 = alphas_ref[1]

    dot = lambda a, b: jnp.dot(a, b, preferred_element_type=jnp.float32)
    prelu = lambda v, a: jnp.where(v >= 0, v, a * v)

    x = x_ref[0]                                            # (C, HW)
    coef = coef_ref[...]                                    # (8, HW)
    m_ncol = coef[0:1]          # 1.0 except last column   -> 0.0
    m_nrow = coef[1:2]          # 1.0 except last row      -> 0.0
    m_nrc = coef[2:3]           # m_ncol * m_nrow
    b_up = coef[3:4]            # 0.25 except first row    -> 0.0
    b_dn = coef[4:5]            # 0.25 except last row     -> 0.0
    b_l = coef[5:6]             # 0.25 except first column -> 0.0
    b_r = coef[6:7]             # 0.25 except last column  -> 0.0

    # y[k] = v[k + s]  (pull from higher flat index)   == np.roll by len - s
    pull = lambda v, s: pltpu.roll(v, v.shape[-1] - s, axis=1)
    # y[k] = v[k - s]  (pull from lower flat index)    == np.roll by s
    push = lambda v, s: pltpu.roll(v, s, axis=1)

    # ------------------------------ top path ------------------------------
    t1 = prelu(dot(w1_ref[...], x), a1)                     # (C, HW)

    # zero-padded spatial shifts of t1 (XLU rolls * precomputed boundary masks)
    t1_r = m_ncol * pull(t1, 1)                             # t1[i, j+1]
    t1_d = m_nrow * pull(t1, W)                             # t1[i+1, j]
    t1_dr = m_nrc * pull(t1, W + 1)                         # t1[i+1, j+1]

    # ConvTranspose2d(3, s=2, p=1, op=1) parity decomposition, K-fused into a
    # single matmul.  Rows [p*C:(p+1)*C] of sub_all hold parity p = 2*dy + dx.
    t_stack = jnp.concatenate([t1, t1_r, t1_d, t1_dr], axis=0)   # (4C, HW)
    sub_all = prelu(dot(taps_ref[...], t_stack), a2)             # (4C, HW)

    # ----------------------------- bottom path ----------------------------
    # bilinear x2 (align_corners=False) == separable 0.75/0.25 lerps with
    # precomputed edge-clamping coefficients (pure VPU fma's, no selects).
    r0 = x + b_up * (push(x, W) - x)                        # even output rows
    r1 = x + b_dn * (pull(x, W) - x)                        # odd output rows
    b00 = r0 + b_l * (push(r0, 1) - r0)                     # (dy, dx) = (0, 0)
    b01 = r0 + b_r * (pull(r0, 1) - r0)                     # (0, 1)
    b10 = r1 + b_l * (push(r1, 1) - r1)                     # (1, 0)
    b11 = r1 + b_r * (pull(r1, 1) - r1)                     # (1, 1)
    bots = (b00, b01, b10, b11)

    # ------------------- per-parity combine (no zero blocks) ---------------
    # out_p = [w3 | wb] @ [prelu(sub_p) ; b_p]
    vs = []
    for p in range(4):
        cmb = jnp.concatenate([sub_all[p * C:(p + 1) * C], bots[p]], axis=0)
        vs.append(dot(wcomb_ref[...], cmb))                 # (Co, HW)
    v_stack = jnp.concatenate(vs, axis=0)                   # (4Co, HW)

    # -------- spread to the final output lane space (fused interleave) -----
    # spread[r, 4W*i + 2j] = v_stack[r, i*W + j]; parity offsets are XLU rolls.
    spread = dot(v_stack, s0_ref[...])                      # (4Co, 4HW)
    o = (spread[0 * Co:1 * Co]
         + push(spread[1 * Co:2 * Co], 1)
         + push(spread[2 * Co:3 * Co], 2 * W)
         + push(spread[3 * Co:4 * Co], 2 * W + 1))
    o_ref[0] = o                                            # lane-dense store


# ----------------------------------------------------------------------------
# weight / constant plumbing (tiny, done once per call in the wrapper)
# ----------------------------------------------------------------------------
def _prep_params(w1_t, wt_t, w3_t, wb_t, a1, a2, pack, H, W):
    f32 = jnp.float32
    w1 = jnp.asarray(w1_t, f32)[:, :, 0, 0]                 # (C, C)  (out, in)
    w3 = jnp.asarray(w3_t, f32)[:, :, 0, 0]                 # (Co, C)
    wb = jnp.asarray(wb_t, f32)[:, :, 0, 0]                 # (Co, C)
    wt = jnp.asarray(wt_t, f32)                             # (C_in, C_out, 3, 3)
    C = w1.shape[0]
    HW = H * W

    eye_p = jnp.eye(pack, dtype=f32)
    kro = lambda m: jnp.kron(eye_p, m)                      # image-packing block-diag

    tap = lambda kh, kw: wt[:, :, kh, kw].T                 # (C_out, C_in)
    z = jnp.zeros((C, C), f32)
    # B[s][p]: contribution of shift s (0: t1, 1: t1[i,j+1], 2: t1[i+1,j],
    # 3: t1[i+1,j+1]) to output parity p = 2*dy + dx.  Exact decomposition of
    # ConvTranspose2d(3, stride=2, padding=1, output_padding=1).
    B = [
        [tap(1, 1), tap(1, 2), tap(2, 1), tap(2, 2)],
        [z,         tap(1, 0), z,         tap(2, 0)],
        [z,         z,         tap(0, 1), tap(0, 2)],
        [z,         z,         z,         tap(0, 0)],
    ]
    # K-fused taps: rows = parity blocks, cols = shift blocks (packed with kron)
    taps_fused = jnp.concatenate(
        [jnp.concatenate([kro(B[s][p]) for s in range(4)], axis=1)
         for p in range(4)], axis=0)                        # (4pC, 4pC)

    w1p = kro(w1)                                           # (pC, pC)
    wcomb = jnp.concatenate([kro(w3), kro(wb)], axis=1)     # (pCo, 2pC)

    # spread operator: S0[i*W + j, 4W*i + 2j] = 1  (dense only in the small-HW
    # regime; see TODO(synk) at top for production-size scaling)
    ks = np.arange(HW)
    ii = ks // W
    jj = ks % W
    S0 = np.zeros((HW, 4 * HW), np.float32)
    S0[ks, 4 * W * ii + 2 * jj] = 1.0
    s0 = jnp.asarray(S0)

    # per-lane masks / bilinear lerp coefficients
    first_row, last_row = (ii == 0), (ii == H - 1)
    first_col, last_col = (jj == 0), (jj == W - 1)
    m_ncol = (~last_col).astype(np.float32)
    m_nrow = (~last_row).astype(np.float32)
    coef = np.stack([
        m_ncol,
        m_nrow,
        m_ncol * m_nrow,
        np.where(first_row, 0.0, 0.25).astype(np.float32),   # b_up
        np.where(last_row, 0.0, 0.25).astype(np.float32),    # b_dn
        np.where(first_col, 0.0, 0.25).astype(np.float32),   # b_l
        np.where(last_col, 0.0, 0.25).astype(np.float32),    # b_r
        np.zeros(HW, np.float32),
    ]).astype(np.float32)                                    # (8, HW)
    coef = jnp.asarray(coef)

    alphas = jnp.stack([jnp.asarray(a1, f32), jnp.asarray(a2, f32)])   # (2,) SMEM
    return w1p, taps_fused, wcomb, s0, coef, alphas


# ----------------------------------------------------------------------------
# wrapper
# ----------------------------------------------------------------------------
@jax.jit
def upsample_res_forward(x_nchw, w1_t, wt_t, w3_t, wb_t, a1, a2):
    N, C, H, W = x_nchw.shape
    Co = w3_t.shape[0]
    HW = H * W

    # Pack consecutive images onto the sublane/channel axis when C < 8 so the
    # (pC, HW) working tiles fill whole vregs; pack must divide N.
    pack = max(1, 8 // max(C, 1))
    while pack > 1 and N % pack:
        pack -= 1
    G = N // pack
    pC, pCo = pack * C, pack * Co

    w1p, taps_fused, wcomb, s0, coef, alphas = _prep_params(
        w1_t, wt_t, w3_t, wb_t, a1, a2, pack, H, W)

    # free reshape: groups of `pack` consecutive images share one sublane block
    x_flat = jnp.asarray(x_nchw, jnp.float32).reshape(G, pC, HW)

    kernel = functools.partial(_upsample_res_kernel, W, pC, pCo)
    out = pl.pallas_call(
        kernel,
        out_shape=jax.ShapeDtypeStruct((G, pCo, 4 * HW), jnp.float32),
        grid_spec=pltpu.PrefetchScalarGridSpec(
            num_scalar_prefetch=0,
            grid=(G,),
            in_specs=[
                pl.BlockSpec(memory_space=pltpu.MemorySpace.SMEM),      # alphas (2,)
                pl.BlockSpec((1, pC, HW), lambda g: (g, 0, 0)),         # x group
                pl.BlockSpec((pC, pC), lambda g: (0, 0)),               # w1 (packed)
                pl.BlockSpec((4 * pC, 4 * pC), lambda g: (0, 0)),       # fused taps
                pl.BlockSpec((pCo, 2 * pC), lambda g: (0, 0)),          # [w3|wb]
                pl.BlockSpec((HW, 4 * HW), lambda g: (0, 0)),           # spread op
                pl.BlockSpec((8, HW), lambda g: (0, 0)),                # masks/coefs
            ],
            out_specs=pl.BlockSpec((1, pCo, 4 * HW), lambda g: (g, 0, 0)),
        ),
        compiler_params=pltpu.CompilerParams(
            dimension_semantics=("parallel",),
            vmem_limit_bytes=64 * 1024 * 1024,
        ),
    )(alphas, x_flat, w1p, taps_fused, wcomb, s0, coef)

    # Kernel already emits the final interleaved layout:
    #   out[g, img*Co + c, (2i+dy)*2W + 2j+dx] == out_nchw[g*pack+img, c, 2i+dy, 2j+dx]
    # so this reshape is free (no data movement).
    return out.reshape(N, Co, 2 * H, 2 * W)


# ----------------------------------------------------------------------------
# pure-JAX reference (mirrors PyTorch semantics) for validation
# ----------------------------------------------------------------------------
def reference_forward(x, w1_t, wt_t, w3_t, wb_t, a1, a2):
    hp = lax.Precision.HIGHEST
    prelu = lambda v, a: jnp.where(v >= 0, v, a * v)

    def conv1x1(y, w):  # w: (O, I, 1, 1)
        return jnp.einsum('nchw,oc->nohw', y, w[:, :, 0, 0], precision=hp)

    N, C, H, W = x.shape
    t = prelu(conv1x1(x, w1_t), a1)

    # ConvTranspose2d(C, C, 3, stride=2, padding=1, output_padding=1), no bias
    full = jnp.zeros((N, C, 2 * H + 2, 2 * W + 2), x.dtype)
    for kh in range(3):
        for kw in range(3):
            contrib = jnp.einsum('nchw,co->nohw', t, wt_t[:, :, kh, kw], precision=hp)
            full = full.at[:, :, kh:kh + 2 * H:2, kw:kw + 2 * W:2].add(contrib)
    tt = full[:, :, 1:2 * H + 1, 1:2 * W + 1]
    top = conv1x1(prelu(tt, a2), w3_t)

    # bilinear x2 upsample, align_corners=False (PyTorch convention)
    def axis_idx(n_in):
        d = np.arange(2 * n_in, dtype=np.float64)
        src = np.maximum((d + 0.5) * 0.5 - 0.5, 0.0)
        i0 = np.clip(np.floor(src).astype(np.int64), 0, n_in - 1)
        i1 = np.minimum(i0 + 1, n_in - 1)
        lam = jnp.asarray((src - i0).astype(np.float32))
        return i0, i1, lam

    h0, h1, lh = axis_idx(H)
    wi0, wi1, lw = axis_idx(W)
    xh = (x[:, :, h0, :] * (1 - lh)[None, None, :, None]
          + x[:, :, h1, :] * lh[None, None, :, None])
    xb = xh[:, :, :, wi0] * (1 - lw) + xh[:, :, :, wi1] * lw
    bot = conv1x1(xb, wb_t)
    return top + bot


# ----------------------------------------------------------------------------
if __name__ == "__main__":
    N, C, H, W = 2, 4, 16, 16
    Co = C // 2

    key = jax.random.PRNGKey(0)
    k_x, k_w1, k_wt, k_w3, k_wb = jax.random.split(key, 5)
    x = jax.random.normal(k_x, (N, C, H, W), jnp.float32)

    # deterministic parameter init (PyTorch shapes; bias=False everywhere)
    w1_t = 0.3 * jax.random.normal(k_w1, (C, C, 1, 1), jnp.float32)   # Conv2d(C, C, 1)
    wt_t = 0.3 * jax.random.normal(k_wt, (C, C, 3, 3), jnp.float32)   # ConvTranspose2d(C, C, 3): (in, out, kh, kw)
    w3_t = 0.3 * jax.random.normal(k_w3, (Co, C, 1, 1), jnp.float32)  # Conv2d(C, C//2, 1)
    wb_t = 0.3 * jax.random.normal(k_wb, (Co, C, 1, 1), jnp.float32)  # Conv2d(C, C//2, 1)
    a1 = 0.25   # nn.PReLU() default
    a2 = 0.25   # nn.PReLU() default

    out = upsample_res_forward(x, w1_t, wt_t, w3_t, wb_t, a1, a2)
    out = jax.block_until_ready(out)
    assert out.shape == (N, Co, 2 * H, 2 * W), out.shape

    ref = jax.block_until_ready(reference_forward(x, w1_t, wt_t, w3_t, wb_t, a1, a2))
    err = float(jnp.max(jnp.abs(out - ref)))
    if not np.isfinite(err) or err > 2e-3:
        raise AssertionError(f"Pallas kernel mismatch vs reference: max abs err = {err}")

    print("KERNEL_OK")
</pallas_src>

<mosaic_0001>
module attributes {stable_mosaic.version = 11 : i64} {
  func.func @_upsample_res_kernel(%arg0: i32, %arg1: memref<2xf32, #tpu.memory_space<smem>>, %arg2: memref<1x8x256xf32, #tpu.memory_space<vmem>>, %arg3: memref<8x8xf32, #tpu.memory_space<vmem>>, %arg4: memref<32x32xf32, #tpu.memory_space<vmem>>, %arg5: memref<4x16xf32, #tpu.memory_space<vmem>>, %arg6: memref<256x1024xf32, #tpu.memory_space<vmem>>, %arg7: memref<8x256xf32, #tpu.memory_space<vmem>>, %arg8: memref<1x4x1024xf32, #tpu.memory_space<vmem>>) attributes {dimension_semantics = [#tpu.dimension_semantics<parallel>], iteration_bounds = array<i64: 1>, scalar_prefetch = 0 : i64, scratch_operands = 0 : i64, tpu.core_type = #tpu.core_type<tc>, window_params = [{transform_indices = @transform_0, window_bounds = array<i64: 2>}, {transform_indices = @transform_1, window_bounds = array<i64: 1, 8, 256>}, {pipeline_mode = #tpu.pipeline_mode<synchronous>, transform_indices = @transform_2, window_bounds = array<i64: 8, 8>}, {pipeline_mode = #tpu.pipeline_mode<synchronous>, transform_indices = @transform_3, window_bounds = array<i64: 32, 32>}, {pipeline_mode = #tpu.pipeline_mode<synchronous>, transform_indices = @transform_4, window_bounds = array<i64: 4, 16>}, {pipeline_mode = #tpu.pipeline_mode<synchronous>, transform_indices = @transform_5, window_bounds = array<i64: 256, 1024>}, {pipeline_mode = #tpu.pipeline_mode<synchronous>, transform_indices = @transform_6, window_bounds = array<i64: 8, 256>}, {transform_indices = @transform_7, window_bounds = array<i64: 1, 4, 1024>}]} {
    %c0 = arith.constant 0 : index
    %0 = memref.load %arg1[%c0] : memref<2xf32, #tpu.memory_space<smem>>
    %c1 = arith.constant 1 : index
    %1 = memref.load %arg1[%c1] : memref<2xf32, #tpu.memory_space<smem>>
    %c0_0 = arith.constant 0 : index
    %c0_1 = arith.constant 0 : index
    %c0_2 = arith.constant 0 : index
    %2 = vector.load %arg2[%c0_0, %c0_1, %c0_2] : memref<1x8x256xf32, #tpu.memory_space<vmem>>, vector<1x8x256xf32>
    %3 = vector.shape_cast %2 : vector<1x8x256xf32> to vector<8x256xf32>
    %c0_3 = arith.constant 0 : index
    %c0_4 = arith.constant 0 : index
    %4 = vector.load %arg7[%c0_3, %c0_4] : memref<8x256xf32, #tpu.memory_space<vmem>>, vector<8x256xf32>
    %5 = vector.extract_strided_slice %4 {offsets = [0, 0], sizes = [1, 256], strides = [1, 1]} : vector<8x256xf32> to vector<1x256xf32>
    %6 = vector.extract_strided_slice %4 {offsets = [1, 0], sizes = [1, 256], strides = [1, 1]} : vector<8x256xf32> to vector<1x256xf32>
    %7 = vector.extract_strided_slice %4 {offsets = [2, 0], sizes = [1, 256], strides = [1, 1]} : vector<8x256xf32> to vector<1x256xf32>
    %8 = vector.extract_strided_slice %4 {offsets = [3, 0], sizes = [1, 256], strides = [1, 1]} : vector<8x256xf32> to vector<1x256xf32>
    %9 = vector.extract_strided_slice %4 {offsets = [4, 0], sizes = [1, 256], strides = [1, 1]} : vector<8x256xf32> to vector<1x256xf32>
    %10 = vector.extract_strided_slice %4 {offsets = [5, 0], sizes = [1, 256], strides = [1, 1]} : vector<8x256xf32> to vector<1x256xf32>
    %11 = vector.extract_strided_slice %4 {offsets = [6, 0], sizes = [1, 256], strides = [1, 1]} : vector<8x256xf32> to vector<1x256xf32>
    %c0_5 = arith.constant 0 : index
    %c0_6 = arith.constant 0 : index
    %12 = vector.load %arg3[%c0_5, %c0_6] : memref<8x8xf32, #tpu.memory_space<vmem>>, vector<8x8xf32>
    %cst = arith.constant dense<0.000000e+00> : vector<8x256xf32>
    %13 = tpu.matmul %12, %3, %cst {dimension_numbers = #tpu.dot_dimension_numbers<[1], [0], [0], [1], [0, 0, 1, 1], [], []>} : vector<8x8xf32>, vector<8x256xf32>, vector<8x256xf32> -> vector<8x256xf32>
    %cst_7 = arith.constant 0.000000e+00 : f32
    %14 = vector.broadcast %cst_7 : f32 to vector<8x256xf32>
    %15 = arith.cmpf oge, %13, %14 : vector<8x256xf32>
    %16 = vector.broadcast %0 : f32 to vector<8x256xf32>
    %17 = arith.mulf %16, %13 : vector<8x256xf32>
    %18 = arith.select %15, %13, %17 : vector<8x256xi1>, vector<8x256xf32>
    %c255_i32 = arith.constant 255 : i32
    %19 = tpu.dynamic_rotate %18 by %c255_i32 dim 1 : vector<8x256xf32>, i32 -> vector<8x256xf32>
    %20 = vector.broadcast %5 : vector<1x256xf32> to vector<8x256xf32>
    %21 = arith.mulf %20, %19 : vector<8x256xf32>
    %c240_i32 = arith.constant 240 : i32
    %22 = tpu.dynamic_rotate %18 by %c240_i32 dim 1 : vector<8x256xf32>, i32 -> vector<8x256xf32>
    %23 = vector.broadcast %6 : vector<1x256xf32> to vector<8x256xf32>
    %24 = arith.mulf %23, %22 : vector<8x256xf32>
    %c239_i32 = arith.constant 239 : i32
    %25 = tpu.dynamic_rotate %18 by %c239_i32 dim 1 : vector<8x256xf32>, i32 -> vector<8x256xf32>
    %26 = vector.broadcast %7 : vector<1x256xf32> to vector<8x256xf32>
    %27 = arith.mulf %26, %25 : vector<8x256xf32>
    %28 = tpu.concatenate %18, %21, %24, %27 in 0 : vector<8x256xf32>, vector<8x256xf32>, vector<8x256xf32>, vector<8x256xf32> -> vector<32x256xf32>
    %c0_8 = arith.constant 0 : index
    %c0_9 = arith.constant 0 : index
    %29 = vector.load %arg4[%c0_8, %c0_9] : memref<32x32xf32, #tpu.memory_space<vmem>>, vector<32x32xf32>
    %cst_10 = arith.constant dense<0.000000e+00> : vector<32x256xf32>
    %30 = tpu.matmul %29, %28, %cst_10 {dimension_numbers = #tpu.dot_dimension_numbers<[1], [0], [0], [1], [0, 0, 1, 1], [], []>} : vector<32x32xf32>, vector<32x256xf32>, vector<32x256xf32> -> vector<32x256xf32>
    %cst_11 = arith.constant 0.000000e+00 : f32
    %31 = vector.broadcast %cst_11 : f32 to vector<32x256xf32>
    %32 = arith.cmpf oge, %30, %31 : vector<32x256xf32>
    %33 = vector.broadcast %1 : f32 to vector<32x256xf32>
    %34 = arith.mulf %33, %30 : vector<32x256xf32>
    %35 = arith.select %32, %30, %34 : vector<32x256xi1>, vector<32x256xf32>
    %c16_i32 = arith.constant 16 : i32
    %36 = tpu.dynamic_rotate %3 by %c16_i32 dim 1 : vector<8x256xf32>, i32 -> vector<8x256xf32>
    %37 = arith.subf %36, %3 : vector<8x256xf32>
    %38 = vector.broadcast %8 : vector<1x256xf32> to vector<8x256xf32>
    %39 = arith.mulf %38, %37 : vector<8x256xf32>
    %40 = arith.addf %3, %39 : vector<8x256xf32>
    %c240_i32_12 = arith.constant 240 : i32
    %41 = tpu.dynamic_rotate %3 by %c240_i32_12 dim 1 : vector<8x256xf32>, i32 -> vector<8x256xf32>
    %42 = arith.subf %41, %3 : vector<8x256xf32>
    %43 = vector.broadcast %9 : vector<1x256xf32> to vector<8x256xf32>
    %44 = arith.mulf %43, %42 : vector<8x256xf32>
    %45 = arith.addf %3, %44 : vector<8x256xf32>
    %c1_i32 = arith.constant 1 : i32
    %46 = tpu.dynamic_rotate %40 by %c1_i32 dim 1 : vector<8x256xf32>, i32 -> vector<8x256xf32>
    %47 = arith.subf %46, %40 : vector<8x256xf32>
    %48 = vector.broadcast %10 : vector<1x256xf32> to vector<8x256xf32>
    %49 = arith.mulf %48, %47 : vector<8x256xf32>
    %50 = arith.addf %40, %49 : vector<8x256xf32>
    %c255_i32_13 = arith.constant 255 : i32
    %51 = tpu.dynamic_rotate %40 by %c255_i32_13 dim 1 : vector<8x256xf32>, i32 -> vector<8x256xf32>
    %52 = arith.subf %51, %40 : vector<8x256xf32>
    %53 = vector.broadcast %11 : vector<1x256xf32> to vector<8x256xf32>
    %54 = arith.mulf %53, %52 : vector<8x256xf32>
    %55 = arith.addf %40, %54 : vector<8x256xf32>
    %c1_i32_14 = arith.constant 1 : i32
    %56 = tpu.dynamic_rotate %45 by %c1_i32_14 dim 1 : vector<8x256xf32>, i32 -> vector<8x256xf32>
    %57 = arith.subf %56, %45 : vector<8x256xf32>
    %58 = vector.broadcast %10 : vector<1x256xf32> to vector<8x256xf32>
    %59 = arith.mulf %58, %57 : vector<8x256xf32>
    %60 = arith.addf %45, %59 : vector<8x256xf32>
    %c255_i32_15 = arith.constant 255 : i32
    %61 = tpu.dynamic_rotate %45 by %c255_i32_15 dim 1 : vector<8x256xf32>, i32 -> vector<8x256xf32>
    %62 = arith.subf %61, %45 : vector<8x256xf32>
    %63 = vector.broadcast %11 : vector<1x256xf32> to vector<8x256xf32>
    %64 = arith.mulf %63, %62 : vector<8x256xf32>
    %65 = arith.addf %45, %64 : vector<8x256xf32>
    %66 = vector.extract_strided_slice %35 {offsets = [0, 0], sizes = [8, 256], strides = [1, 1]} : vector<32x256xf32> to vector<8x256xf32>
    %67 = tpu.concatenate %66, %50 in 0 : vector<8x256xf32>, vector<8x256xf32> -> vector<16x256xf32>
    %c0_16 = arith.constant 0 : index
    %c0_17 = arith.constant 0 : index
    %68 = vector.load %arg5[%c0_16, %c0_17] : memref<4x16xf32, #tpu.memory_space<vmem>>, vector<4x16xf32>
    %cst_18 = arith.constant dense<0.000000e+00> : vector<4x256xf32>
    %69 = tpu.matmul %68, %67, %cst_18 {dimension_numbers = #tpu.dot_dimension_numbers<[1], [0], [0], [1], [0, 0, 1, 1], [], []>} : vector<4x16xf32>, vector<16x256xf32>, vector<4x256xf32> -> vector<4x256xf32>
    %70 = vector.extract_strided_slice %35 {offsets = [8, 0], sizes = [8, 256], strides = [1, 1]} : vector<32x256xf32> to vector<8x256xf32>
    %71 = tpu.concatenate %70, %55 in 0 : vector<8x256xf32>, vector<8x256xf32> -> vector<16x256xf32>
    %c0_19 = arith.constant 0 : index
    %c0_20 = arith.constant 0 : index
    %72 = vector.load %arg5[%c0_19, %c0_20] : memref<4x16xf32, #tpu.memory_space<vmem>>, vector<4x16xf32>
    %cst_21 = arith.constant dense<0.000000e+00> : vector<4x256xf32>
    %73 = tpu.matmul %72, %71, %cst_21 {dimension_numbers = #tpu.dot_dimension_numbers<[1], [0], [0], [1], [0, 0, 1, 1], [], []>} : vector<4x16xf32>, vector<16x256xf32>, vector<4x256xf32> -> vector<4x256xf32>
    %74 = vector.extract_strided_slice %35 {offsets = [16, 0], sizes = [8, 256], strides = [1, 1]} : vector<32x256xf32> to vector<8x256xf32>
    %75 = tpu.concatenate %74, %60 in 0 : vector<8x256xf32>, vector<8x256xf32> -> vector<16x256xf32>
    %c0_22 = arith.constant 0 : index
    %c0_23 = arith.constant 0 : index
    %76 = vector.load %arg5[%c0_22, %c0_23] : memref<4x16xf32, #tpu.memory_space<vmem>>, vector<4x16xf32>
    %cst_24 = arith.constant dense<0.000000e+00> : vector<4x256xf32>
    %77 = tpu.matmul %76, %75, %cst_24 {dimension_numbers = #tpu.dot_dimension_numbers<[1], [0], [0], [1], [0, 0, 1, 1], [], []>} : vector<4x16xf32>, vector<16x256xf32>, vector<4x256xf32> -> vector<4x256xf32>
    %78 = vector.extract_strided_slice %35 {offsets = [24, 0], sizes = [8, 256], strides = [1, 1]} : vector<32x256xf32> to vector<8x256xf32>
    %79 = tpu.concatenate %78, %65 in 0 : vector<8x256xf32>, vector<8x256xf32> -> vector<16x256xf32>
    %c0_25 = arith.constant 0 : index
    %c0_26 = arith.constant 0 : index
    %80 = vector.load %arg5[%c0_25, %c0_26] : memref<4x16xf32, #tpu.memory_space<vmem>>, vector<4x16xf32>
    %cst_27 = arith.constant dense<0.000000e+00> : vector<4x256xf32>
    %81 = tpu.matmul %80, %79, %cst_27 {dimension_numbers = #tpu.dot_dimension_numbers<[1], [0], [0], [1], [0, 0, 1, 1], [], []>} : vector<4x16xf32>, vector<16x256xf32>, vector<4x256xf32> -> vector<4x256xf32>
    %82 = tpu.concatenate %69, %73, %77, %81 in 0 : vector<4x256xf32>, vector<4x256xf32>, vector<4x256xf32>, vector<4x256xf32> -> vector<16x256xf32>
    %c0_28 = arith.constant 0 : index
    %c0_29 = arith.constant 0 : index
    %83 = vector.load %arg6[%c0_28, %c0_29] : memref<256x1024xf32, #tpu.memory_space<vmem>>, vector<256x1024xf32>
    %cst_30 = arith.constant dense<0.000000e+00> : vector<16x1024xf32>
    %84 = tpu.matmul %82, %83, %cst_30 {dimension_numbers = #tpu.dot_dimension_numbers<[1], [0], [0], [1], [0, 0, 1, 1], [], []>} : vector<16x256xf32>, vector<256x1024xf32>, vector<16x1024xf32> -> vector<16x1024xf32>
    %85 = vector.extract_strided_slice %84 {offsets = [0, 0], sizes = [4, 1024], strides = [1, 1]} : vector<16x1024xf32> to vector<4x1024xf32>
    %86 = vector.extract_strided_slice %84 {offsets = [4, 0], sizes = [4, 1024], strides = [1, 1]} : vector<16x1024xf32> to vector<4x1024xf32>
    %c1_i32_31 = arith.constant 1 : i32
    %87 = tpu.dynamic_rotate %86 by %c1_i32_31 dim 1 : vector<4x1024xf32>, i32 -> vector<4x1024xf32>
    %88 = arith.addf %85, %87 : vector<4x1024xf32>
    %89 = vector.extract_strided_slice %84 {offsets = [8, 0], sizes = [4, 1024], strides = [1, 1]} : vector<16x1024xf32> to vector<4x1024xf32>
    %c32_i32 = arith.constant 32 : i32
    %90 = tpu.dynamic_rotate %89 by %c32_i32 dim 1 : vector<4x1024xf32>, i32 -> vector<4x1024xf32>
    %91 = arith.addf %88, %90 : vector<4x1024xf32>
    %92 = vector.extract_strided_slice %84 {offsets = [12, 0], sizes = [4, 1024], strides = [1, 1]} : vector<16x1024xf32> to vector<4x1024xf32>
    %c33_i32 = arith.constant 33 : i32
    %93 = tpu.dynamic_rotate %92 by %c33_i32 dim 1 : vector<4x1024xf32>, i32 -> vector<4x1024xf32>
    %94 = arith.addf %91, %93 : vector<4x1024xf32>
    %c0_32 = arith.constant 0 : index
    %c0_33 = arith.constant 0 : index
    %c0_34 = arith.constant 0 : index
    %95 = vector.load %arg8[%c0_32, %c0_33, %c0_34] : memref<1x4x1024xf32, #tpu.memory_space<vmem>>, vector<1x4x1024xf32>
    %96 = vector.shape_cast %95 : vector<1x4x1024xf32> to vector<4x1024xf32>
    %97 = vector.shape_cast %94 : vector<4x1024xf32> to vector<1x4x1024xf32>
    tpu.vector_store %arg8[%c0_32, %c0_33, %c0_34], %97 {strides = array<i32>} : memref<1x4x1024xf32, #tpu.memory_space<vmem>>, vector<1x4x1024xf32>,
    return
  }
  func.func @transform_0(%arg0: i32) -> i32 {
    %c0_i32 = arith.constant 0 : i32
    %c0_i32_0 = arith.constant 0 : i32
    return %c0_i32 : i32
  }
  func.func @transform_1(%arg0: i32) -> (i32, i32, i32) {
    %c0_i32 = arith.constant 0 : i32
    %c0_i32_0 = arith.constant 0 : i32
    %c0_i32_1 = arith.constant 0 : i32
    return %arg0, %c0_i32, %c0_i32_0 : i32, i32, i32
  }
  func.func @transform_2(%arg0: i32) -> (i32, i32) {
    %c0_i32 = arith.constant 0 : i32
    %c0_i32_0 = arith.constant 0 : i32
    %c0_i32_1 = arith.constant 0 : i32
    return %c0_i32, %c0_i32_0 : i32, i32
  }
  func.func @transform_3(%arg0: i32) -> (i32, i32) {
    %c0_i32 = arith.constant 0 : i32
    %c0_i32_0 = arith.constant 0 : i32
    %c0_i32_1 = arith.constant 0 : i32
    return %c0_i32, %c0_i32_0 : i32, i32
  }
  func.func @transform_4(%arg0: i32) -> (i32, i32) {
    %c0_i32 = arith.constant 0 : i32
    %c0_i32_0 = arith.constant 0 : i32
    %c0_i32_1 = arith.constant 0 : i32
    return %c0_i32, %c0_i32_0 : i32, i32
  }
  func.func @transform_5(%arg0: i32) -> (i32, i32) {
    %c0_i32 = arith.constant 0 : i32
    %c0_i32_0 = arith.constant 0 : i32
    %c0_i32_1 = arith.constant 0 : i32
    return %c0_i32, %c0_i32_0 : i32, i32
  }
  func.func @transform_6(%arg0: i32) -> (i32, i32) {
    %c0_i32 = arith.constant 0 : i32
    %c0_i32_0 = arith.constant 0 : i32
    %c0_i32_1 = arith.constant 0 : i32
    return %c0_i32, %c0_i32_0 : i32, i32
  }
  func.func @transform_7(%arg0: i32) -> (i32, i32, i32) {
    %c0_i32 = arith.constant 0 : i32
    %c0_i32_0 = arith.constant 0 : i32
    %c0_i32_1 = arith.constant 0 : i32
    return %arg0, %c0_i32, %c0_i32_0 : i32, i32, i32
  }
}

</mosaic_0001>

<bundles_post_ra>
// kernel: upsample_res_forward.1
= control target key start
LH: loop header
LB: loop body
LE: loop exit
PB: predicated region body
PF: predicated region fallthrough
CT: control target
= control target key end

     0   :  { %12 = vsyncpa [#allocation4], 0  ;;  %s1927_s0 = inlined_call_operand.vmem [shape: f32[2], index: 0, kind: input, shape index: {}]   ;;  %s1928_s1 = inlined_call_operand.vmem [shape: f32[1,8,256], index: 1, kind: input, shape index: {}]   ;;  %s1929_s2 = inlined_call_operand.vmem [shape: f32[8,8], index: 2, kind: input, shape index: {}]   ;;  %s1930_s3 = inlined_call_operand.vmem [shape: f32[32,32], index: 3, kind: input, shape index: {}]   ;;  %s1931_s4 = inlined_call_operand.vmem [shape: f32[4,16], index: 4, kind: input, shape index: {}]   ;;  %s1932_s5 = inlined_call_operand.hbm [shape: f32[256,1024], index: 5, kind: input, shape index: {}]   ;;  %s1933_s6 = inlined_call_operand.vmem [shape: f32[8,256], index: 6, kind: input, shape index: {}]   ;;  %s1934_s7 = inlined_call_operand.vmem [shape: f32[1,4,1024], index: 7, kind: output, shape index: {}]  }
   0x1   :  { %s20_s26 = sshll.u32 %s1927_s0, 4  ;;  %s21_s26 = int_to_ptr.vmem [resolvable:$true] %s20_s26 }
   0x2   :  { %13 = vsyncpa [#allocation3], 0  ;;  %s1496_s27 = scalar_lea.vmem %s21_s26, 16  ;;  %p1501_p1 = scmp.lt.s32.totalorder %s21_s26, %s21_s26 }
   0x3   :  { %p1497_p0 = scmp.ne.s32.totalorder %s21_s26, %s1496_s27  ;;  %p1502_p2 = scmp.lt.s32.totalorder %s1496_s27, %s1496_s27 }
   0x5   :  { %p1503_p3 = por %p1502_p2, %p1501_p1 }
   0x7   :  { %p1504_p4 = pnand %p1503_p3, %p1497_p0 }
   0x9   :  { %1507 = shalt.err (!%p1504_p4)
}
   0xa   :  { %s1532_s28 = smov [#allocation2]   ;;  %s1533_s29 = smov [#allocation5]  }
   0xb   :  { %23 = dma.vmem_to_smem %s21_s26, 16, %s1532_s28, [#allocation4]  }
   0xc   :  { %s37_s30 = sshll.u32 %s1533_s29, 4  ;;  %s38_s30 = int_to_ptr.vmem [resolvable:$true] %s37_s30 }
   0xd   :  { %s1516_s8 = scalar_lea.vmem %s38_s30, 32768  ;;  %p1521_p6 = scmp.lt.s32.totalorder %s38_s30, %s38_s30 }
   0xe   :  { %p1517_p5 = scmp.ne.s32.totalorder %s38_s30, %s1516_s8  ;;  %p1522_p7 = scmp.lt.s32.totalorder %s1516_s8, %s1516_s8 }
  0x10   :  { %p1523_p8 = por %p1522_p7, %p1521_p6 }
  0x12   :  { %p1524_p9 = pnand %p1523_p8, %p1517_p5 }
  0x14   :  { %1527 = shalt.err (!%p1524_p9)
}
  0x15   :  { %s1534_s0 = smov 1024   ;;  %s1535_s9 = smov 64  }
  0x16   :  { %43 = dma.hbm_to_vmem [thread:$0]  %s1932_s5, 32768, %s38_s30, [#allocation3], %s1534_s0, %s1534_s0, %s1535_s9  }
  0x17   :  { %1528 = dma.done.wait [#allocation4], 16  }
  0x18   :  { %1529 = vsyncadd [#allocation4], 4294967280 }
  0x19   :  { %1530 = dma.done.wait [#allocation3], 32768  }
  0x1a   :  { %1531 = vsyncadd [#allocation3], 4294934528 }
  0x1b   :  { %52 = sfence }
  0x1c   :  { %v1593_v0 = vld [vmem:[%s1928_s1 + $0x8] sm:$0xff]  ;;  %v1598_v1 = vld [vmem:[%s1928_s1] sm:$0xff]  ;;  %vm60_vm0 = vcmask 64512   ;;  %v1536_v3 = vmov 0.0   ;;  %s53_s5 = sld [smem:[#allocation2]]  ;;  %s1537_s1 = smov 112   ;;  %v146_v11 = vlaneseq }
  0x1d   :  { %v59_v2 = vld [vmem:[%s1929_s2] sm:$0xff]  ;;  %94 = vmatprep.subr.mxu1 %v1593_v0  ;;  %128 = vmatprep.mubr.f32.mxu1 %v1536_v3  ;;  %s1538_s2 = smov 111   ;;  %s1539_s18 = smov 127   ;;  %v1637_v16 = vld [vmem:[%s1933_s6 + $0x8] sm:$0xff]  ;;  %vm199_vm7 = vcmask 261120   ;;  %vm433_vm11 = vcmask 130048  }
  0x1e   :  { %95 = vmatpush1.msra.mxu1 %v1598_v1  ;;  %501 = vmatprep.mubr.f32.mxu0 %v1536_v3  ;;  %s1540_s19 = smov 16   ;;  %v1624_v12 = vshrl.u32 %v146_v11, 7  ;;  %v1626_v13 = vand.u32 127, %v146_v11  ;;  %v1632_v15 = vld [vmem:[%s1933_s6] sm:$0xff]  ;;  %v196_v59 = vld [vmem:[%s1930_s3 + $0x8] sm:$0xff]  ;;  %s1541_s27 = smov 1  }
  0x1f   :  { %1475 = vmatmul.mubr.msk.f32.vlgmr.msra.gmra.mxu1 %vm60_vm0, %v59_v2  ;;  %v195_v51 = vld [vmem:[%s1930_s3] sm:$0xff]  ;;  %v198_v11 = vld [vmem:[%s1930_s3 + $0x18] sm:$0xff]  ;;  %s1543_s10 = smov 33  }
  0x20   :  { %276 = vmatprep.mubr.f32.mxu1 %v1536_v3  ;;  %v187_v14 = vsub.s32 2, %v1624_v12  ;;  %v170_v19 = vsub.s32 1, %v1624_v12  ;;  %v153_v20 = vsub.s32 0, %v1624_v12  ;;  %vm165_vm3 = vcmp.lt.s32.totalorder %v1626_v13, 112 }
  0x21   :  { %vm182_vm4 = vcmp.lt.s32.totalorder %v1626_v13, 111  ;;  %vm148_vm5 = vcmp.lt.s32.totalorder %v1626_v13, 127  ;;  %v337_v38 = vsub.s32 3, %v1624_v12  ;;  %vm330_vm6 = vcmp.lt.s32.totalorder %v1626_v13, 16 }
  0x22   :  { %v137_v4 = vstv %s53_s5  ;;  %v188_v21 = vrot.slane %v1632_v15, %v187_v14  ;;  %v192_v22 = vrot.slane %v1637_v16, %v187_v14  ;;  %v171_v23 = vrot.slane %v1632_v15, %v170_v19  ;;  %v851_v14 = vld [vmem:[#allocation5 + $0x388] sm:$0xff] }
  0x23   :  { %v175_v24 = vrot.slane %v1637_v16, %v170_v19  ;;  %v154_v30 = vrot.slane %v1632_v15, %v153_v20  ;;  %v158_v34 = vrot.slane %v1637_v16, %v153_v20  ;;  %v338_v45 = vrot.slane %v1632_v15, %v337_v38  ;;  %v842_v19 = vld [vmem:[#allocation5 + $0x340] sm:$0xff]  ;;  %v835_v20 = vld [vmem:[#allocation5 + $0x308] sm:$0xff] }
  0x24   :  { %v342_v46 = vrot.slane %v1637_v16, %v337_v38  ;;  %v357_v48 = vsub.s32 4, %v1624_v12  ;;  %v763_v38 = vld [vmem:[#allocation5 + $0xc8] sm:$0xff]  ;;  %vm371_vm8 = vcmp.lt.s32.totalorder %v1626_v13, 1 }
  0x26   :  { %v358_v57 = vrot.slane %v1632_v15, %v357_v48  ;;  %v362_v60 = vrot.slane %v1637_v16, %v357_v48  ;;  %v986_v48 = vld [vmem:[#allocation5 + $0x7c0] sm:$0xff] }
  0xdf   :  { %v130_v5 = vpop.f32.mrf.mxu1 }
  0xe0   :  { %vm135_vm1 = vcmp.ge.f32.partialorder %v130_v5, 0.0  ;;  %v138_v6 = vmul.f32 %v137_v4, %v130_v5 }
  0xe1   :  { %v132_v7 = vpop.f32.mrf.mxu1 }
  0xe2   :  { %v139_v8 = vmul.f32 %v137_v4, %v132_v7  ;;  %v1608_v9 = vsel %vm135_vm1, %v130_v5, %v138_v6  ;;  %vm136_vm2 = vcmp.ge.f32.partialorder %v132_v7, 0.0 }
  0xe3   :  { %161 = vrot.lane.b32.xlu1 %v1608_v9, %s1537_s1  ;;  %178 = vrot.lane.b32.xlu0 %v1608_v9, %s1538_s2 }
  0xe4   :  { %v1612_v10 = vsel %vm136_vm2, %v132_v7, %v139_v8  ;;  %v197_v8 = vld [vmem:[%s1930_s3 + $0x10] sm:$0xff]  ;;  %s1474_s3 = sld [smem:[#allocation2 + $0x1]]  ;;  %vm733_vm2 = vcmask 1043456  }
  0xe7   :  { %163 = vrot.lane.b32.xlu1 %v1612_v10, %s1537_s1  ;;  %180 = vrot.lane.b32.xlu0 %v1612_v10, %s1538_s2 }
  0xeb   :  { %144 = vrot.lane.b32.xlu1 %v1612_v10, %s1539_s18  ;;  %142 = vrot.lane.b32.xlu0 %v1608_v9, %s1539_s18 }
  0xef   :  { %328 = vrot.lane.b32.xlu1 %v1593_v0, %s1540_s19  ;;  %326 = vrot.lane.b32.xlu0 %v1598_v1, %s1540_s19 }
  0xf3   :  { %349 = vrot.lane.b32.xlu1 %v1593_v0, %s1537_s1  ;;  %347 = vrot.lane.b32.xlu0 %v1598_v1, %s1537_s1 }
 0x155   :  { %v162_v17 = vpop.permute.xlu1 %161  ;;  %v179_v18 = vpop.permute.xlu0 %178 }
 0x159   :  { %v164_v25 = vpop.permute.xlu1 %163  ;;  %v181_v26 = vpop.permute.xlu0 %180 }
 0x15a   :  { %v167_v27 = vsel %vm165_vm3, %v164_v25, %v162_v17  ;;  %v183_v28 = vsel %vm182_vm4, %v179_v18, %v181_v26  ;;  %v184_v29 = vsel %vm182_vm4, %v181_v26, %v179_v18  ;;  %v166_v31 = vsel %vm165_vm3, %v162_v17, %v164_v25  ;;  %v850_v17 = vld [vmem:[#allocation5 + $0x380] sm:$0xff]  ;;  %v843_v18 = vld [vmem:[#allocation5 + $0x348] sm:$0xff] }
 0x15b   :  { %v193_v32 = vmul.f32 %v188_v21, %v183_v28  ;;  %v194_v33 = vmul.f32 %v192_v22, %v184_v29  ;;  %v177_v35 = vmul.f32 %v175_v24, %v167_v27  ;;  %v176_v39 = vmul.f32 %v171_v23, %v166_v31  ;;  %v834_v21 = vld [vmem:[#allocation5 + $0x300] sm:$0xff]  ;;  %v827_v22 = vld [vmem:[#allocation5 + $0x2c8] sm:$0xff] }
 0x15c   :  { %v826_v23 = vld [vmem:[#allocation5 + $0x2c0] sm:$0xff]  ;;  %v819_v24 = vld [vmem:[#allocation5 + $0x288] sm:$0xff]  ;;  %vm1431_vm4 = vcmp.lt.s32.totalorder %v1626_v13, 33 }
 0x15d   :  { %v145_v36 = vpop.permute.xlu1 %144  ;;  %236 = vmatprep.subr.mxu1 %v194_v33  ;;  %v143_v37 = vpop.permute.xlu0 %142  ;;  %v818_v25 = vld [vmem:[#allocation5 + $0x280] sm:$0xff]  ;;  %v811_v26 = vld [vmem:[#allocation5 + $0x248] sm:$0xff] }
 0x15e   :  { %v149_v40 = vsel %vm148_vm5, %v143_v37, %v145_v36  ;;  %v150_v41 = vsel %vm148_vm5, %v145_v36, %v143_v37  ;;  %237 = vmatpush1.msra.mxu1 %v193_v32  ;;  %v810_v27 = vld [vmem:[#allocation5 + $0x240] sm:$0xff]  ;;  %v803_v28 = vld [vmem:[#allocation5 + $0x208] sm:$0xff] }
 0x15f   :  { %v159_v42 = vmul.f32 %v154_v30, %v149_v40  ;;  %v160_v43 = vmul.f32 %v158_v34, %v150_v41  ;;  %238 = vmatprep.subr.mxu1 %v177_v35  ;;  %v802_v29 = vld [vmem:[#allocation5 + $0x200] sm:$0xff]  ;;  %v795_v30 = vld [vmem:[#allocation5 + $0x1c8] sm:$0xff] }
 0x160   :  { %239 = vmatpush1.msra.mxu1 %v176_v39  ;;  %v794_v31 = vld [vmem:[#allocation5 + $0x1c0] sm:$0xff]  ;;  %v787_v32 = vld [vmem:[#allocation5 + $0x188] sm:$0xff] }
 0x161   :  { %v329_v44 = vpop.permute.xlu1 %328  ;;  %240 = vmatprep.subr.mxu1 %v160_v43  ;;  %v327_v47 = vpop.permute.xlu0 %326  ;;  %v786_v33 = vld [vmem:[#allocation5 + $0x180] sm:$0xff]  ;;  %v779_v34 = vld [vmem:[#allocation5 + $0x148] sm:$0xff] }
 0x162   :  { %v331_v49 = vsel %vm330_vm6, %v327_v47, %v329_v44  ;;  %v332_v50 = vsel %vm330_vm6, %v329_v44, %v327_v47  ;;  %241 = vmatpush1.msra.mxu1 %v159_v42  ;;  %v778_v35 = vld [vmem:[#allocation5 + $0x140] sm:$0xff]  ;;  %v771_v36 = vld [vmem:[#allocation5 + $0x108] sm:$0xff] }
 0x163   :  { %v333_v52 = vsub.f32 %v332_v50, %v1598_v1  ;;  %v334_v53 = vsub.f32 %v331_v49, %v1593_v0  ;;  %242 = vmatprep.subr.mxu1 %v1612_v10  ;;  %v770_v37 = vld [vmem:[#allocation5 + $0x100] sm:$0xff]  ;;  %v755_v40 = vld [vmem:[#allocation5 + $0x88] sm:$0xff] }
 0x164   :  { %243 = vmatpush1.msra.mxu1 %v1608_v9  ;;  %v762_v39 = vld [vmem:[#allocation5 + $0xc0] sm:$0xff]  ;;  %v747_v42 = vld [vmem:[#allocation5 + $0x48] sm:$0xff] }
 0x165   :  { %v343_v54 = vmul.f32 %v338_v45, %v333_v52  ;;  %v344_v55 = vmul.f32 %v342_v46, %v334_v53  ;;  %1476 = vmatmul.mubr.msk.f32.vlgmr.msra.gmra.mxu1 %vm199_vm7, %v195_v51  ;;  %v350_v56 = vpop.permute.xlu1 %349  ;;  %v348_v58 = vpop.permute.xlu0 %347  ;;  %v754_v41 = vld [vmem:[#allocation5 + $0x80] sm:$0xff]  ;;  %v739_v44 = vld [vmem:[#allocation5 + $0x8] sm:$0xff]  ;;  %v378_v46 = vsub.s32 5, %v1624_v12 }
 0x166   :  { %282 = vmatprep.mubr.f32.mxu1 %v1536_v3  ;;  %v351_v61 = vsel %vm165_vm3, %v348_v58, %v350_v56  ;;  %v352_v62 = vsel %vm165_vm3, %v350_v56, %v348_v58  ;;  %v746_v43 = vld [vmem:[#allocation5 + $0x40] sm:$0xff]  ;;  %v987_v47 = vld [vmem:[#allocation5 + $0x7c8] sm:$0xff]  ;;  %vm1374_vm3 = vcmp.lt.s32.totalorder %v1626_v13, 32 }
 0x167   :  { %v1682_v63 = vadd.f32 %v343_v54, %v1598_v1  ;;  %v1685_v2 = vadd.f32 %v344_v55, %v1593_v0  ;;  %v353_v4 = vsub.f32 %v351_v61, %v1598_v1  ;;  %v354_v5 = vsub.f32 %v352_v62, %v1593_v0  ;;  %v738_v45 = vld [vmem:[#allocation5] sm:$0xff]  ;;  %v979_v49 = vld [vmem:[#allocation5 + $0x788] sm:$0xff] }
 0x168   :  { %v978_v51 = vld [vmem:[#allocation5 + $0x780] sm:$0xff]  ;;  %v1725_v53 = vrot.slane %v1637_v16, %v378_v46  ;;  %v1728_v54 = vrot.slane %v1632_v15, %v378_v46  ;;  %v971_v55 = vld [vmem:[#allocation5 + $0x748] sm:$0xff] }
 0x169   :  { %1477 = vmatmul.mubr.msk.f32.gmra.mxu1 %vm199_vm7, %v196_v59  ;;  %367 = vrot.lane.b32.xlu0 %v1682_v63, %s1541_s27  ;;  %v363_v6 = vmul.f32 %v358_v57, %v353_v4  ;;  %v364_v7 = vmul.f32 %v362_v60, %v354_v5  ;;  %v970_v58 = vld [vmem:[#allocation5 + $0x740] sm:$0xff]  ;;  %v963_v61 = vld [vmem:[#allocation5 + $0x708] sm:$0xff] }
 0x16a   :  { %369 = vrot.lane.b32.xlu1 %v1685_v2, %s1541_s27  ;;  %288 = vmatprep.mubr.f32.mxu1 %v1536_v3  ;;  %v962_v62 = vld [vmem:[#allocation5 + $0x700] sm:$0xff] }
 0x16b   :  { %v1699_v9 = vadd.f32 %v363_v6, %v1598_v1  ;;  %v1705_v10 = vadd.f32 %v364_v7, %v1593_v0  ;;  %v859_v0 = vld [vmem:[#allocation5 + $0x3c8] sm:$0xff]  ;;  %v858_v1 = vld [vmem:[#allocation5 + $0x3c0] sm:$0xff] }
 0x16c   :  { %994 = vmatprep.subr.mxu1 %v859_v0  ;;  %v955_v6 = vld [vmem:[#allocation5 + $0x6c8] sm:$0xff]  ;;  %v954_v7 = vld [vmem:[#allocation5 + $0x6c0] sm:$0xff] }
 0x16d   :  { %1478 = vmatmul.mubr.msk.f32.gmra.mxu1 %vm199_vm7, %v197_v8  ;;  %388 = vrot.lane.b32.xlu0 %v1682_v63, %s1539_s18  ;;  %v947_v0 = vld [vmem:[#allocation5 + $0x688] sm:$0xff] }
 0x16e   :  { %390 = vrot.lane.b32.xlu1 %v1685_v2, %s1539_s18  ;;  %294 = vmatprep.mubr.f32.mxu1 %v1536_v3 }
 0x16f   :  { %995 = vmatpush1.msra.mxu1 %v858_v1  ;;  %v946_v1 = vld [vmem:[#allocation5 + $0x680] sm:$0xff] }
 0x170   :  { %996 = vmatprep.subr.mxu1 %v851_v14  ;;  %v939_v14 = vld [vmem:[#allocation5 + $0x648] sm:$0xff] }
 0x171   :  { %1479 = vmatmul.mubr.msk.f32.gmra.mxu1 %vm199_vm7, %v198_v11  ;;  %408 = vrot.lane.b32.xlu0 %v1699_v9, %s1541_s27 }
 0x172   :  { %410 = vrot.lane.b32.xlu1 %v1705_v10, %s1541_s27  ;;  %997 = vmatpush1.msra.mxu1 %v850_v17  ;;  %v938_v17 = vld [vmem:[#allocation5 + $0x640] sm:$0xff] }
 0x173   :  { %998 = vmatprep.subr.mxu1 %v843_v18  ;;  %v931_v18 = vld [vmem:[#allocation5 + $0x608] sm:$0xff] }
 0x174   :  { %999 = vmatpush1.msra.mxu1 %v842_v19  ;;  %v930_v19 = vld [vmem:[#allocation5 + $0x600] sm:$0xff] }
 0x175   :  { %420 = vrot.lane.b32.xlu0 %v1699_v9, %s1539_s18  ;;  %1000 = vmatprep.subr.mxu1 %v835_v20  ;;  %v923_v20 = vld [vmem:[#allocation5 + $0x5c8] sm:$0xff] }
 0x176   :  { %422 = vrot.lane.b32.xlu1 %v1705_v10, %s1539_s18  ;;  %1001 = vmatpush1.msra.mxu1 %v834_v21  ;;  %v922_v21 = vld [vmem:[#allocation5 + $0x5c0] sm:$0xff] }
 0x177   :  { %1002 = vmatprep.subr.mxu1 %v827_v22  ;;  %v915_v22 = vld [vmem:[#allocation5 + $0x588] sm:$0xff] }
 0x178   :  { %1003 = vmatpush1.msra.mxu1 %v826_v23  ;;  %v914_v23 = vld [vmem:[#allocation5 + $0x580] sm:$0xff] }
 0x179   :  { %1004 = vmatprep.subr.mxu1 %v819_v24  ;;  %v907_v24 = vld [vmem:[#allocation5 + $0x548] sm:$0xff] }
 0x17a   :  { %1005 = vmatpush1.msra.mxu1 %v818_v25  ;;  %v906_v25 = vld [vmem:[#allocation5 + $0x540] sm:$0xff] }
 0x17b   :  { %1006 = vmatprep.subr.mxu1 %v811_v26 }
 0x17c   :  { %1007 = vmatpush1.msra.mxu1 %v810_v27 }
 0x17d   :  { %1008 = vmatprep.subr.mxu1 %v803_v28  ;;  %v398_v28 = vsub.s32 6, %v1624_v12 }
 0x17e   :  { %1009 = vmatpush1.msra.mxu1 %v802_v29 }
 0x17f   :  { %1010 = vmatprep.subr.mxu1 %v795_v30 }
 0x180   :  { %1011 = vmatpush1.msra.mxu1 %v794_v31 }
 0x181   :  { %1012 = vmatprep.subr.mxu1 %v787_v32 }
 0x182   :  { %1013 = vmatpush1.msra.mxu1 %v786_v33  ;;  %v399_v33 = vrot.slane %v1632_v15, %v398_v28 }
 0x183   :  { %1014 = vmatprep.subr.mxu1 %v779_v34  ;;  %v403_v34 = vrot.slane %v1637_v16, %v398_v28  ;;  %v844_v28 = vld [vmem:[#allocation5 + $0x350] sm:$0xff] }
 0x184   :  { %1015 = vmatpush1.msra.mxu1 %v778_v35 }
 0x185   :  { %1016 = vmatprep.subr.mxu1 %v771_v36 }
 0x186   :  { %1017 = vmatpush1.msra.mxu1 %v770_v37 }
 0x187   :  { %1018 = vmatprep.subr.mxu1 %v763_v38 }
 0x188   :  { %1019 = vmatpush1.msra.mxu1 %v762_v39  ;;  %v1753_v39 = vstv %s1474_s3 }
 0x189   :  { %1020 = vmatprep.subr.mxu1 %v755_v40 }
 0x18a   :  { %1021 = vmatpush1.msra.mxu1 %v754_v41 }
 0x18b   :  { %1022 = vmatprep.subr.mxu1 %v747_v42 }
 0x18c   :  { %1023 = vmatpush1.msra.mxu1 %v746_v43 }
 0x18d   :  { %1024 = vmatprep.subr.mxu1 %v739_v44 }
 0x18e   :  { %1025 = vmatpush1.msra.mxu1 %v738_v45 }
 0x18f   :  { %1026 = vmatprep.subr.mxu1 %v987_v47 }
 0x190   :  { %1027 = vmatpush2.msra.mxu1 %v986_v48 }
 0x191   :  { %1028 = vmatprep.subr.mxu1 %v979_v49 }
 0x192   :  { %1029 = vmatpush2.msra.mxu1 %v978_v51 }
 0x193   :  { %1030 = vmatprep.subr.mxu1 %v971_v55  ;;  %v432_v55 = vld [vmem:[%s1931_s4] sm:$0xf]  ;;  %s1542_s4 = smov 32  }
 0x194   :  { %1031 = vmatpush2.msra.mxu1 %v970_v58 }
 0x195   :  { %1032 = vmatprep.subr.mxu1 %v963_v61 }
 0x196   :  { %1033 = vmatpush2.msra.mxu1 %v962_v62 }
 0x197   :  { %1034 = vmatprep.subr.mxu1 %v955_v6 }
 0x198   :  { %1035 = vmatpush2.msra.mxu1 %v954_v7 }
 0x199   :  { %1036 = vmatprep.subr.mxu1 %v947_v0 }
 0x19a   :  { %1037 = vmatpush2.msra.mxu1 %v946_v1 }
 0x19b   :  { %1038 = vmatprep.subr.mxu1 %v939_v14 }
 0x19c   :  { %1039 = vmatpush2.msra.mxu1 %v938_v17 }
 0x19d   :  { %1040 = vmatprep.subr.mxu1 %v931_v18 }
 0x19e   :  { %1041 = vmatpush2.msra.mxu1 %v930_v19 }
 0x19f   :  { %1042 = vmatprep.subr.mxu1 %v923_v20 }
 0x1a0   :  { %1043 = vmatpush2.msra.mxu1 %v922_v21 }
 0x1a1   :  { %1044 = vmatprep.subr.mxu1 %v915_v22 }
 0x1a2   :  { %1045 = vmatpush2.msra.mxu1 %v914_v23 }
 0x1a3   :  { %1046 = vmatprep.subr.mxu1 %v907_v24 }
 0x1a4   :  { %1047 = vmatpush2.msra.mxu1 %v906_v25  ;;  %v861_v25 = vld [vmem:[#allocation5 + $0x3d8] sm:$0xff] }
 0x1db   :  { %v368_v50 = vpop.permute.xlu0 %367 }
 0x1dc   :  { %v370_v52 = vpop.permute.xlu1 %369 }
 0x1dd   :  { %v372_v56 = vsel %vm371_vm8, %v368_v50, %v370_v52  ;;  %v373_v57 = vsel %vm371_vm8, %v370_v52, %v368_v50 }
 0x1de   :  { %v374_v59 = vsub.f32 %v373_v57, %v1682_v63  ;;  %v375_v60 = vsub.f32 %v372_v56, %v1685_v2 }
 0x1df   :  { %v389_v26 = vpop.permute.xlu0 %388 }
 0x1e0   :  { %v385_v4 = vmul.f32 %v1725_v53, %v375_v60  ;;  %v384_v5 = vmul.f32 %v1728_v54, %v374_v59  ;;  %v391_v27 = vpop.permute.xlu1 %390 }
 0x1e1   :  { %v392_v30 = vsel %vm148_vm5, %v389_v26, %v391_v27  ;;  %v393_v31 = vsel %vm148_vm5, %v391_v27, %v389_v26  ;;  %v860_v26 = vld [vmem:[#allocation5 + $0x3d0] sm:$0xff]  ;;  %v853_v27 = vld [vmem:[#allocation5 + $0x398] sm:$0xff] }
 0x1e2   :  { %v387_v8 = vadd.f32 %v385_v4, %v1685_v2  ;;  %v386_v11 = vadd.f32 %v384_v5, %v1682_v63  ;;  %v394_v35 = vsub.f32 %v392_v30, %v1682_v63  ;;  %v395_v36 = vsub.f32 %v393_v31, %v1685_v2  ;;  %v836_v30 = vld [vmem:[#allocation5 + $0x310] sm:$0xff]  ;;  %v829_v31 = vld [vmem:[#allocation5 + $0x2d8] sm:$0xff] }
 0x1e3   :  { %v409_v29 = vpop.permute.xlu0 %408 }
 0x1e4   :  { %465 = vmatprep.subr.mxu0 %v387_v8  ;;  %v411_v32 = vpop.permute.xlu1 %410  ;;  %v404_v42 = vmul.f32 %v399_v33, %v394_v35  ;;  %v405_v43 = vmul.f32 %v403_v34, %v395_v36  ;;  %v812_v35 = vld [vmem:[#allocation5 + $0x250] sm:$0xff]  ;;  %v805_v36 = vld [vmem:[#allocation5 + $0x218] sm:$0xff] }
 0x1e5   :  { %466 = vmatpush1.msra.mxu0 %v386_v11  ;;  %v413_v37 = vsel %vm371_vm8, %v411_v32, %v409_v29  ;;  %v412_v12 = vsel %vm371_vm8, %v409_v29, %v411_v32  ;;  %v837_v29 = vld [vmem:[#allocation5 + $0x318] sm:$0xff] }
 0x1e6   :  { %v414_v15 = vsub.f32 %v413_v37, %v1699_v9  ;;  %v415_v16 = vsub.f32 %v412_v12, %v1705_v10  ;;  %v406_v50 = vadd.f32 %v404_v42, %v1682_v63  ;;  %v407_v56 = vadd.f32 %v405_v43, %v1685_v2  ;;  %v821_v32 = vld [vmem:[#allocation5 + $0x298] sm:$0xff]  ;;  %v804_v37 = vld [vmem:[#allocation5 + $0x210] sm:$0xff] }
 0x1e7   :  { %v421_v38 = vpop.permute.xlu0 %420  ;;  %v797_v12 = vld [vmem:[#allocation5 + $0x1d8] sm:$0xff]  ;;  %v780_v42 = vld [vmem:[#allocation5 + $0x150] sm:$0xff] }
 0x1e8   :  { %v423_v40 = vpop.permute.xlu1 %422  ;;  %v416_v51 = vmul.f32 %v414_v15, %v1728_v54  ;;  %v417_v57 = vmul.f32 %v415_v16, %v1725_v53  ;;  %v773_v43 = vld [vmem:[#allocation5 + $0x118] sm:$0xff]  ;;  %v772_v15 = vld [vmem:[#allocation5 + $0x110] sm:$0xff] }
 0x1e9   :  { %v425_v46 = vsel %vm148_vm5, %v423_v40, %v421_v38  ;;  %v424_v48 = vsel %vm148_vm5, %v421_v38, %v423_v40  ;;  %v796_v38 = vld [vmem:[#allocation5 + $0x1d0] sm:$0xff]  ;;  %v765_v16 = vld [vmem:[#allocation5 + $0xd8] sm:$0xff] }
 0x1ea   :  { %v427_v58 = vsub.f32 %v425_v46, %v1705_v10  ;;  %v426_v63 = vsub.f32 %v424_v48, %v1699_v9  ;;  %v419_v7 = vadd.f32 %v417_v57, %v1705_v10  ;;  %v418_v8 = vadd.f32 %v416_v51, %v1699_v9  ;;  %v788_v40 = vld [vmem:[#allocation5 + $0x190] sm:$0xff]  ;;  %v989_v51 = vld [vmem:[#allocation5 + $0x7d8] sm:$0xff] }
 0x1eb   :  { %v756_v46 = vld [vmem:[#allocation5 + $0x90] sm:$0xff]  ;;  %v973_v57 = vld [vmem:[#allocation5 + $0x758] sm:$0xff] }
 0x1ec   :  { %v429_v4 = vmul.f32 %v427_v58, %v403_v34  ;;  %v428_v11 = vmul.f32 %v426_v63, %v399_v33  ;;  %v820_v33 = vld [vmem:[#allocation5 + $0x290] sm:$0xff]  ;;  %v813_v34 = vld [vmem:[#allocation5 + $0x258] sm:$0xff] }
 0x1ed   :  { %v748_v48 = vld [vmem:[#allocation5 + $0x50] sm:$0xff] }
 0x1ee   :  { %v431_v20 = vadd.f32 %v429_v4, %v1705_v10  ;;  %v430_v21 = vadd.f32 %v428_v11, %v1699_v9  ;;  %v852_v9 = vld [vmem:[#allocation5 + $0x390] sm:$0xff]  ;;  %v845_v10 = vld [vmem:[#allocation5 + $0x358] sm:$0xff] }
 0x1ef   :  { %v972_v58 = vld [vmem:[#allocation5 + $0x750] sm:$0xff]  ;;  %v933_v4 = vld [vmem:[#allocation5 + $0x618] sm:$0xff] }
 0x1f0   :  { %v956_v63 = vld [vmem:[#allocation5 + $0x6d0] sm:$0xff] }
 0x1f1   :  { %v916_v11 = vld [vmem:[#allocation5 + $0x590] sm:$0xff] }
 0x225   :  { %v278_v41 = vpop.f32.mrf.mxu1 }
 0x226   :  { %v310_v44 = vmul.f32 %v1753_v39, %v278_v41  ;;  %vm301_vm9 = vcmp.ge.f32.partialorder %v278_v41, 0.0 }
 0x227   :  { %v280_v45 = vpop.f32.mrf.mxu1 }
 0x228   :  { %vm302_vm10 = vcmp.ge.f32.partialorder %v280_v45, 0.0  ;;  %v311_v47 = vmul.f32 %v1753_v39, %v280_v45  ;;  %v318_v61 = vsel %vm301_vm9, %v278_v41, %v310_v44  ;;  %v781_v41 = vld [vmem:[#allocation5 + $0x158] sm:$0xff]  ;;  %v764_v44 = vld [vmem:[#allocation5 + $0xd0] sm:$0xff] }
 0x229   :  { %v284_v49 = vpop.f32.mrf.mxu1 }
 0x22a   :  { %v319_v52 = vsel %vm302_vm10, %v280_v45, %v311_v47  ;;  %v312_v59 = vmul.f32 %v1753_v39, %v284_v49  ;;  %vm303_vm12 = vcmp.ge.f32.partialorder %v284_v49, 0.0  ;;  %v757_v45 = vld [vmem:[#allocation5 + $0x98] sm:$0xff] }
 0x22b   :  { %v286_v60 = vpop.f32.mrf.mxu1  ;;  %467 = vmatprep.subr.mxu0 %v319_v52  ;;  %v749_v47 = vld [vmem:[#allocation5 + $0x58] sm:$0xff]  ;;  %v988_v52 = vld [vmem:[#allocation5 + $0x7d0] sm:$0xff] }
 0x22c   :  { %vm304_vm13 = vcmp.ge.f32.partialorder %v286_v60, 0.0  ;;  %v313_v54 = vmul.f32 %v1753_v39, %v286_v60  ;;  %468 = vmatpush1.msra.mxu0 %v318_v61  ;;  %v320_v6 = vsel %vm303_vm12, %v284_v49, %v312_v59  ;;  %v741_v49 = vld [vmem:[#allocation5 + $0x18] sm:$0xff] }
 0x22d   :  { %v290_v62 = vpop.f32.mrf.mxu1  ;;  %1480 = vmatmul.mubr.msk.f32.vlgmr.msra.gmra.mxu0 %vm433_vm11, %v432_v55  ;;  %536 = vmatprep.subr.mxu0 %v407_v56  ;;  %v980_v56 = vld [vmem:[#allocation5 + $0x790] sm:$0xff]  ;;  %v965_v59 = vld [vmem:[#allocation5 + $0x718] sm:$0xff] }
 0x22e   :  { %vm305_vm14 = vcmp.ge.f32.partialorder %v290_v62, 0.0  ;;  %v314_v2 = vmul.f32 %v1753_v39, %v290_v62  ;;  %537 = vmatpush1.msra.mxu0 %v406_v50  ;;  %v321_v53 = vsel %vm304_vm13, %v286_v60, %v313_v54  ;;  %572 = vmatprep.mubr.f32.mxu0 %v1536_v3  ;;  %v740_v50 = vld [vmem:[#allocation5 + $0x10] sm:$0xff]  ;;  %v957_v61 = vld [vmem:[#allocation5 + $0x6d8] sm:$0xff] }
 0x22f   :  { %v292_v5 = vpop.f32.mrf.mxu1  ;;  %538 = vmatprep.subr.mxu0 %v321_v53  ;;  %v964_v60 = vld [vmem:[#allocation5 + $0x710] sm:$0xff]  ;;  %v949_v54 = vld [vmem:[#allocation5 + $0x698] sm:$0xff] }
 0x230   :  { %vm306_vm15 = vcmp.ge.f32.partialorder %v292_v5, 0.0  ;;  %v315_v0 = vmul.f32 %v1753_v39, %v292_v5  ;;  %539 = vmatpush1.msra.mxu0 %v320_v6  ;;  %v322_v14 = vsel %vm305_vm14, %v290_v62, %v314_v2  ;;  %v948_v62 = vld [vmem:[#allocation5 + $0x690] sm:$0xff]  ;;  %v941_v2 = vld [vmem:[#allocation5 + $0x658] sm:$0xff] }
 0x231   :  { %v296_v1 = vpop.f32.mrf.mxu1  ;;  %1481 = vmatmul.mubr.msk.f32.vlgmr.msra.gmra.mxu0 %vm433_vm11, %v432_v55  ;;  %607 = vmatprep.subr.mxu0 %v419_v7  ;;  %v940_v53 = vld [vmem:[#allocation5 + $0x650] sm:$0xff]  ;;  %v925_v6 = vld [vmem:[#allocation5 + $0x5d8] sm:$0xff] }
 0x232   :  { %vm307_vm0 = vcmp.ge.f32.partialorder %v296_v1, 0.0  ;;  %v316_v17 = vmul.f32 %v1753_v39, %v296_v1  ;;  %608 = vmatpush1.msra.mxu0 %v418_v8  ;;  %v323_v18 = vsel %vm306_vm15, %v292_v5, %v315_v0  ;;  %643 = vmatprep.mubr.f32.mxu0 %v1536_v3  ;;  %v932_v5 = vld [vmem:[#allocation5 + $0x610] sm:$0xff]  ;;  %v917_v8 = vld [vmem:[#allocation5 + $0x598] sm:$0xff] }
 0x233   :  { %v298_v19 = vpop.f32.mrf.mxu1  ;;  %609 = vmatprep.subr.mxu0 %v323_v18  ;;  %v924_v7 = vld [vmem:[#allocation5 + $0x5d0] sm:$0xff]  ;;  %v909_v0 = vld [vmem:[#allocation5 + $0x558] sm:$0xff]  ;;  %v898_v18 = vld [vmem:[#allocation5 + $0x500] sm:$0xff] }
 0x234   :  { %vm308_vm1 = vcmp.ge.f32.partialorder %v298_v19, 0.0  ;;  %v317_v22 = vmul.f32 %v1753_v39, %v298_v19  ;;  %610 = vmatpush1.msra.mxu0 %v322_v14  ;;  %v324_v23 = vsel %vm307_vm0, %v296_v1, %v316_v17  ;;  %v789_v39 = vld [vmem:[#allocation5 + $0x198] sm:$0xff]  ;;  %v908_v1 = vld [vmem:[#allocation5 + $0x550] sm:$0xff]  ;;  %v899_v14 = vld [vmem:[#allocation5 + $0x508] sm:$0xff] }
 0x235   :  { %1482 = vmatmul.mubr.msk.f32.vlgmr.msra.gmra.mxu0 %vm433_vm11, %v432_v55  ;;  %678 = vmatprep.subr.mxu0 %v431_v20  ;;  %v901_v17 = vld [vmem:[#allocation5 + $0x518] sm:$0xff]  ;;  %v891_v20 = vld [vmem:[#allocation5 + $0x4c8] sm:$0xff] }
 0x236   :  { %679 = vmatpush1.msra.mxu0 %v430_v21  ;;  %v325_v24 = vsel %vm308_vm1, %v298_v19, %v317_v22  ;;  %714 = vmatprep.mubr.f32.mxu0 %v1536_v3  ;;  %v828_v3 = vld [vmem:[#allocation5 + $0x2d0] sm:$0xff]  ;;  %v893_v21 = vld [vmem:[#allocation5 + $0x4d8] sm:$0xff]  ;;  %v890_v22 = vld [vmem:[#allocation5 + $0x4c0] sm:$0xff] }
 0x237   :  { %680 = vmatprep.subr.mxu0 %v325_v24  ;;  %1048 = vmatprep.subr.mxu1 %v899_v14  ;;  %v900_v19 = vld [vmem:[#allocation5 + $0x510] sm:$0xff]  ;;  %v883_v24 = vld [vmem:[#allocation5 + $0x488] sm:$0xff] }
 0x238   :  { %681 = vmatpush1.msra.mxu0 %v324_v23  ;;  %1049 = vmatpush2.msra.mxu1 %v898_v18  ;;  %v892_v23 = vld [vmem:[#allocation5 + $0x4d0] sm:$0xff]  ;;  %v809_v18 = vld [vmem:[#allocation5 + $0x238] sm:$0xff] }
 0x239   :  { %1483 = vmatmul.mubr.msk.f32.vlgmr.msra.gmra.mxu0 %vm433_vm11, %v432_v55  ;;  %1071 = vmatprep.subr.mxu0 %v861_v25  ;;  %v981_v55 = vld [vmem:[#allocation5 + $0x798] sm:$0xff]  ;;  %v816_v14 = vld [vmem:[#allocation5 + $0x270] sm:$0xff] }
 0x23a   :  { %1072 = vmatpush1.msra.mxu0 %v860_v26  ;;  %1050 = vmatprep.subr.mxu1 %v891_v20  ;;  %v885_v25 = vld [vmem:[#allocation5 + $0x498] sm:$0xff]  ;;  %v882_v26 = vld [vmem:[#allocation5 + $0x480] sm:$0xff]  ;;  %v808_v20 = vld [vmem:[#allocation5 + $0x230] sm:$0xff] }
 0x23b   :  { %1073 = vmatprep.subr.mxu0 %v853_v27  ;;  %1051 = vmatpush2.msra.mxu1 %v890_v22  ;;  %v884_v27 = vld [vmem:[#allocation5 + $0x490] sm:$0xff]  ;;  %v801_v22 = vld [vmem:[#allocation5 + $0x1f8] sm:$0xff] }
 0x23c   :  { %1074 = vmatpush1.msra.mxu0 %v852_v9  ;;  %1052 = vmatprep.subr.mxu1 %v883_v24  ;;  %v875_v9 = vld [vmem:[#allocation5 + $0x448] sm:$0xff]  ;;  %v800_v24 = vld [vmem:[#allocation5 + $0x1f0] sm:$0xff] }
 0x23d   :  { %1075 = vmatprep.subr.mxu0 %v845_v10  ;;  %1053 = vmatpush2.msra.mxu1 %v882_v26  ;;  %v877_v10 = vld [vmem:[#allocation5 + $0x458] sm:$0xff] }
 0x23e   :  { %1076 = vmatpush1.msra.mxu0 %v844_v28  ;;  %1054 = vmatprep.subr.mxu1 %v875_v9  ;;  %v874_v28 = vld [vmem:[#allocation5 + $0x440] sm:$0xff]  ;;  %v793_v26 = vld [vmem:[#allocation5 + $0x1b8] sm:$0xff]  ;;  %v792_v9 = vld [vmem:[#allocation5 + $0x1b0] sm:$0xff] }
 0x23f   :  { %1077 = vmatprep.subr.mxu0 %v837_v29  ;;  %v876_v29 = vld [vmem:[#allocation5 + $0x450] sm:$0xff]  ;;  %1055 = vmatpush2.msra.mxu1 %v874_v28  ;;  %v785_v28 = vld [vmem:[#allocation5 + $0x178] sm:$0xff] }
 0x240   :  { %1078 = vmatpush1.msra.mxu0 %v836_v30  ;;  %v867_v30 = vld [vmem:[#allocation5 + $0x408] sm:$0xff] }
 0x241   :  { %1079 = vmatprep.subr.mxu0 %v829_v31  ;;  %v869_v31 = vld [vmem:[#allocation5 + $0x418] sm:$0xff]  ;;  %1056 = vmatprep.subr.mxu1 %v867_v30  ;;  %v784_v30 = vld [vmem:[#allocation5 + $0x170] sm:$0xff] }
 0x242   :  { %1080 = vmatpush1.msra.mxu0 %v828_v3  ;;  %v866_v3 = vld [vmem:[#allocation5 + $0x400] sm:$0xff] }
 0x243   :  { %1081 = vmatprep.subr.mxu0 %v821_v32  ;;  %v868_v32 = vld [vmem:[#allocation5 + $0x410] sm:$0xff]  ;;  %1057 = vmatpush2.msra.mxu1 %v866_v3  ;;  %v777_v3 = vld [vmem:[#allocation5 + $0x138] sm:$0xff] }
 0x244   :  { %1082 = vmatpush1.msra.mxu0 %v820_v33  ;;  %v863_v33 = vld [vmem:[#allocation5 + $0x3e8] sm:$0xff] }
 0x245   :  { %1083 = vmatprep.subr.mxu0 %v813_v34  ;;  %v865_v34 = vld [vmem:[#allocation5 + $0x3f8] sm:$0xff]  ;;  %1148 = vmatprep.subr.mxu1 %v863_v33  ;;  %v776_v33 = vld [vmem:[#allocation5 + $0x130] sm:$0xff] }
 0x246   :  { %1084 = vmatpush1.msra.mxu0 %v812_v35 }
 0x247   :  { %1085 = vmatprep.subr.mxu0 %v805_v36 }
 0x248   :  { %1086 = vmatpush1.msra.mxu0 %v804_v37 }
 0x249   :  { %1087 = vmatprep.subr.mxu0 %v797_v12 }
 0x24a   :  { %1088 = vmatpush1.msra.mxu0 %v796_v38 }
 0x24b   :  { %1089 = vmatprep.subr.mxu0 %v789_v39 }
 0x24c   :  { %1090 = vmatpush1.msra.mxu0 %v788_v40 }
 0x24d   :  { %1091 = vmatprep.subr.mxu0 %v781_v41 }
 0x24e   :  { %1092 = vmatpush1.msra.mxu0 %v780_v42  ;;  %v862_v42 = vld [vmem:[#allocation5 + $0x3e0] sm:$0xff] }
 0x24f   :  { %1093 = vmatprep.subr.mxu0 %v773_v43  ;;  %v864_v43 = vld [vmem:[#allocation5 + $0x3f0] sm:$0xff] }
 0x250   :  { %1094 = vmatpush1.msra.mxu0 %v772_v15 }
 0x251   :  { %1095 = vmatprep.subr.mxu0 %v765_v16 }
 0x252   :  { %1096 = vmatpush1.msra.mxu0 %v764_v44  ;;  %v855_v44 = vld [vmem:[#allocation5 + $0x3a8] sm:$0xff] }
 0x253   :  { %1097 = vmatprep.subr.mxu0 %v757_v45  ;;  %v857_v45 = vld [vmem:[#allocation5 + $0x3b8] sm:$0xff] }
 0x254   :  { %1098 = vmatpush1.msra.mxu0 %v756_v46  ;;  %v854_v46 = vld [vmem:[#allocation5 + $0x3a0] sm:$0xff] }
 0x255   :  { %1099 = vmatprep.subr.mxu0 %v749_v47  ;;  %v856_v47 = vld [vmem:[#allocation5 + $0x3b0] sm:$0xff] }
 0x256   :  { %1100 = vmatpush1.msra.mxu0 %v748_v48 }
 0x257   :  { %1101 = vmatprep.subr.mxu0 %v741_v49  ;;  %v847_v49 = vld [vmem:[#allocation5 + $0x368] sm:$0xff] }
 0x258   :  { %1102 = vmatpush1.msra.mxu0 %v740_v50  ;;  %v849_v50 = vld [vmem:[#allocation5 + $0x378] sm:$0xff] }
 0x259   :  { %1103 = vmatprep.subr.mxu0 %v989_v51  ;;  %v846_v51 = vld [vmem:[#allocation5 + $0x360] sm:$0xff] }
 0x25a   :  { %1104 = vmatpush2.msra.mxu0 %v988_v52  ;;  %v848_v52 = vld [vmem:[#allocation5 + $0x370] sm:$0xff] }
 0x25b   :  { %1105 = vmatprep.subr.mxu0 %v981_v55 }
 0x25c   :  { %1106 = vmatpush2.msra.mxu0 %v980_v56 }
 0x25d   :  { %1107 = vmatprep.subr.mxu0 %v973_v57  ;;  %v839_v57 = vld [vmem:[#allocation5 + $0x328] sm:$0xff] }
 0x25e   :  { %1108 = vmatpush2.msra.mxu0 %v972_v58  ;;  %v841_v58 = vld [vmem:[#allocation5 + $0x338] sm:$0xff] }
 0x25f   :  { %1109 = vmatprep.subr.mxu0 %v965_v59 }
 0x260   :  { %1110 = vmatpush2.msra.mxu0 %v964_v60  ;;  %v838_v60 = vld [vmem:[#allocation5 + $0x320] sm:$0xff] }
 0x261   :  { %1111 = vmatprep.subr.mxu0 %v957_v61  ;;  %v840_v61 = vld [vmem:[#allocation5 + $0x330] sm:$0xff] }
 0x262   :  { %1112 = vmatpush2.msra.mxu0 %v956_v63 }
 0x263   :  { %1113 = vmatprep.subr.mxu0 %v949_v54  ;;  %v831_v54 = vld [vmem:[#allocation5 + $0x2e8] sm:$0xff] }
 0x264   :  { %1114 = vmatpush2.msra.mxu0 %v948_v62  ;;  %v833_v62 = vld [vmem:[#allocation5 + $0x2f8] sm:$0xff] }
 0x265   :  { %1115 = vmatprep.subr.mxu0 %v941_v2 }
 0x266   :  { %1116 = vmatpush2.msra.mxu0 %v940_v53  ;;  %v830_v53 = vld [vmem:[#allocation5 + $0x2e0] sm:$0xff] }
 0x267   :  { %1117 = vmatprep.subr.mxu0 %v933_v4  ;;  %v832_v4 = vld [vmem:[#allocation5 + $0x2f0] sm:$0xff] }
 0x268   :  { %1118 = vmatpush2.msra.mxu0 %v932_v5  ;;  %v823_v5 = vld [vmem:[#allocation5 + $0x2a8] sm:$0xff] }
 0x269   :  { %1119 = vmatprep.subr.mxu0 %v925_v6  ;;  %v825_v6 = vld [vmem:[#allocation5 + $0x2b8] sm:$0xff] }
 0x26a   :  { %1120 = vmatpush2.msra.mxu0 %v924_v7  ;;  %v822_v7 = vld [vmem:[#allocation5 + $0x2a0] sm:$0xff] }
 0x26b   :  { %1121 = vmatprep.subr.mxu0 %v917_v8  ;;  %v824_v8 = vld [vmem:[#allocation5 + $0x2b0] sm:$0xff] }
 0x26c   :  { %1122 = vmatpush2.msra.mxu0 %v916_v11  ;;  %v815_v11 = vld [vmem:[#allocation5 + $0x268] sm:$0xff] }
 0x26d   :  { %1123 = vmatprep.subr.mxu0 %v909_v0  ;;  %v817_v0 = vld [vmem:[#allocation5 + $0x278] sm:$0xff] }
 0x26e   :  { %1124 = vmatpush2.msra.mxu0 %v908_v1  ;;  %v814_v1 = vld [vmem:[#allocation5 + $0x260] sm:$0xff] }
 0x26f   :  { %1125 = vmatprep.subr.mxu0 %v901_v17  ;;  %v807_v17 = vld [vmem:[#allocation5 + $0x228] sm:$0xff] }
 0x270   :  { %1126 = vmatpush2.msra.mxu0 %v900_v19  ;;  %v806_v19 = vld [vmem:[#allocation5 + $0x220] sm:$0xff] }
 0x271   :  { %1127 = vmatprep.subr.mxu0 %v893_v21  ;;  %v799_v21 = vld [vmem:[#allocation5 + $0x1e8] sm:$0xff] }
 0x272   :  { %1128 = vmatpush2.msra.mxu0 %v892_v23  ;;  %v798_v23 = vld [vmem:[#allocation5 + $0x1e0] sm:$0xff] }
 0x273   :  { %1129 = vmatprep.subr.mxu0 %v885_v25  ;;  %v791_v25 = vld [vmem:[#allocation5 + $0x1a8] sm:$0xff] }
 0x274   :  { %1130 = vmatpush2.msra.mxu0 %v884_v27  ;;  %v790_v27 = vld [vmem:[#allocation5 + $0x1a0] sm:$0xff] }
 0x275   :  { %1131 = vmatprep.subr.mxu0 %v877_v10  ;;  %v783_v10 = vld [vmem:[#allocation5 + $0x168] sm:$0xff] }
 0x276   :  { %1132 = vmatpush2.msra.mxu0 %v876_v29  ;;  %v782_v29 = vld [vmem:[#allocation5 + $0x160] sm:$0xff] }
 0x277   :  { %1133 = vmatprep.subr.mxu0 %v869_v31  ;;  %v775_v31 = vld [vmem:[#allocation5 + $0x128] sm:$0xff] }
 0x278   :  { %1134 = vmatpush2.msra.mxu0 %v868_v32  ;;  %v774_v32 = vld [vmem:[#allocation5 + $0x120] sm:$0xff] }
 0x279   :  { %1225 = vmatprep.subr.mxu0 %v865_v34  ;;  %v767_v34 = vld [vmem:[#allocation5 + $0xe8] sm:$0xff] }
 0x2ed   :  { %v503_v35 = vpop.f32.mrf.mxu0 }
 0x2ef   :  { %v505_v36 = vpop.f32.mrf.mxu0 }
 0x2f1   :  { %v574_v37 = vpop.f32.mrf.mxu0 }
 0x2f2   :  { %v723_v12 = vrot.slane %v574_v37, 4  ;;  %v768_v37 = vld [vmem:[#allocation5 + $0xf0] sm:$0xff] }
 0x2f3   :  { %v576_v38 = vpop.f32.mrf.mxu0 }
 0x2f4   :  { %v724_v39 = vrot.slane %v576_v38, 4  ;;  %v1793_v15 = vsel %vm733_vm2, %v503_v35, %v723_v12  ;;  %v769_v35 = vld [vmem:[#allocation5 + $0xf8] sm:$0xff]  ;;  %v759_v12 = vld [vmem:[#allocation5 + $0xa8] sm:$0xff] }
 0x2f5   :  { %v645_v40 = vpop.f32.mrf.mxu0  ;;  %v761_v38 = vld [vmem:[#allocation5 + $0xb8] sm:$0xff] }
 0x2f6   :  { %v735_v41 = vsel %vm733_vm2, %v505_v36, %v724_v39  ;;  %v766_v36 = vld [vmem:[#allocation5 + $0xe0] sm:$0xff] }
 0x2f7   :  { %v647_v16 = vpop.f32.mrf.mxu0  ;;  %1058 = vmatprep.mubr.f32.mxu1 %v735_v41  ;;  %1135 = vmatprep.mubr.f32.mxu0 %v735_v41  ;;  %v758_v39 = vld [vmem:[#allocation5 + $0xa0] sm:$0xff] }
 0x2f8   :  { %1059 = vmatmul.mubr.f32.vlgmr.msra.gmra.mxu1 %v1793_v15  ;;  %1136 = vmatmul.mubr.f32.vlgmr.msra.gmra.mxu0 %v1793_v15 }
 0x2f9   :  { %1149 = vmatpush1.msra.mxu1 %v862_v42  ;;  %1226 = vmatpush1.msra.mxu0 %v864_v43  ;;  %v716_v48 = vpop.f32.mrf.mxu0  ;;  %v753_v42 = vld [vmem:[#allocation5 + $0x78] sm:$0xff]  ;;  %v750_v43 = vld [vmem:[#allocation5 + $0x60] sm:$0xff] }
 0x2fa   :  { %1150 = vmatprep.subr.mxu1 %v855_v44  ;;  %1227 = vmatprep.subr.mxu0 %v857_v45  ;;  %v729_v55 = vrot.slane %v716_v48, 4  ;;  %v743_v44 = vld [vmem:[#allocation5 + $0x28] sm:$0xff]  ;;  %v745_v45 = vld [vmem:[#allocation5 + $0x38] sm:$0xff] }
 0x2fb   :  { %1151 = vmatpush1.msra.mxu1 %v854_v46  ;;  %1228 = vmatpush1.msra.mxu0 %v856_v47  ;;  %v718_v56 = vpop.f32.mrf.mxu0  ;;  %v742_v46 = vld [vmem:[#allocation5 + $0x20] sm:$0xff]  ;;  %v744_v47 = vld [vmem:[#allocation5 + $0x30] sm:$0xff]  ;;  %v991_v48 = vld [vmem:[#allocation5 + $0x7e8] sm:$0xff] }
 0x2fc   :  { %v730_v59 = vrot.slane %v718_v56, 4  ;;  %1152 = vmatprep.subr.mxu1 %v847_v49  ;;  %1229 = vmatprep.subr.mxu0 %v849_v50  ;;  %v1801_v2 = vsel %vm733_vm2, %v645_v40, %v729_v55  ;;  %v760_v40 = vld [vmem:[#allocation5 + $0xb0] sm:$0xff]  ;;  %v993_v49 = vld [vmem:[#allocation5 + $0x7f8] sm:$0xff]  ;;  %v990_v50 = vld [vmem:[#allocation5 + $0x7e0] sm:$0xff] }
 0x2fd   :  { %1153 = vmatpush1.msra.mxu1 %v846_v51  ;;  %1230 = vmatpush1.msra.mxu0 %v848_v52  ;;  %v992_v51 = vld [vmem:[#allocation5 + $0x7f0] sm:$0xff]  ;;  %v983_v52 = vld [vmem:[#allocation5 + $0x7a8] sm:$0xff]  ;;  %v985_v55 = vld [vmem:[#allocation5 + $0x7b8] sm:$0xff] }
 0x2fe   :  { %1154 = vmatprep.subr.mxu1 %v839_v57  ;;  %1231 = vmatprep.subr.mxu0 %v841_v58  ;;  %v1798_v63 = vsel %vm733_vm2, %v647_v16, %v730_v59  ;;  %v752_v16 = vld [vmem:[#allocation5 + $0x70] sm:$0xff]  ;;  %v982_v56 = vld [vmem:[#allocation5 + $0x7a0] sm:$0xff]  ;;  %v975_v58 = vld [vmem:[#allocation5 + $0x768] sm:$0xff] }
 0x2ff   :  { %1155 = vmatpush1.msra.mxu1 %v838_v60  ;;  %1232 = vmatpush1.msra.mxu0 %v840_v61  ;;  %v984_v57 = vld [vmem:[#allocation5 + $0x7b0] sm:$0xff]  ;;  %v977_v59 = vld [vmem:[#allocation5 + $0x778] sm:$0xff]  ;;  %v974_v60 = vld [vmem:[#allocation5 + $0x760] sm:$0xff] }
 0x300   :  { %1064 = vmatprep.mubr.f32.mxu1 %v1798_v63  ;;  %1141 = vmatprep.mubr.f32.mxu0 %v1798_v63  ;;  %v976_v61 = vld [vmem:[#allocation5 + $0x770] sm:$0xff] }
 0x301   :  { %1156 = vmatprep.subr.mxu1 %v831_v54  ;;  %1233 = vmatprep.subr.mxu0 %v833_v62  ;;  %v967_v54 = vld [vmem:[#allocation5 + $0x728] sm:$0xff]  ;;  %v969_v62 = vld [vmem:[#allocation5 + $0x738] sm:$0xff] }
 0x302   :  { %1065 = vmatmul.mubr.f32.gmra.mxu1 %v1801_v2  ;;  %1142 = vmatmul.mubr.f32.gmra.mxu0 %v1801_v2 }
 0x303   :  { %1157 = vmatpush1.msra.mxu1 %v830_v53  ;;  %1234 = vmatpush1.msra.mxu0 %v832_v4  ;;  %v966_v53 = vld [vmem:[#allocation5 + $0x720] sm:$0xff]  ;;  %v968_v4 = vld [vmem:[#allocation5 + $0x730] sm:$0xff] }
 0x304   :  { %1158 = vmatprep.subr.mxu1 %v823_v5  ;;  %1212 = vmatprep.mubr.f32.mxu1 %v735_v41  ;;  %v959_v5 = vld [vmem:[#allocation5 + $0x6e8] sm:$0xff] }
 0x305   :  { %1235 = vmatprep.subr.mxu0 %v825_v6  ;;  %1289 = vmatprep.mubr.f32.mxu0 %v735_v41  ;;  %v751_v41 = vld [vmem:[#allocation5 + $0x68] sm:$0xff]  ;;  %v961_v6 = vld [vmem:[#allocation5 + $0x6f8] sm:$0xff] }
 0x306   :  { %1159 = vmatpush1.msra.mxu1 %v822_v7  ;;  %1236 = vmatpush1.msra.mxu0 %v824_v8  ;;  %v958_v7 = vld [vmem:[#allocation5 + $0x6e0] sm:$0xff]  ;;  %v960_v8 = vld [vmem:[#allocation5 + $0x6f0] sm:$0xff] }
 0x307   :  { %1160 = vmatprep.subr.mxu1 %v815_v11  ;;  %1237 = vmatprep.subr.mxu0 %v817_v0  ;;  %v951_v11 = vld [vmem:[#allocation5 + $0x6a8] sm:$0xff]  ;;  %v953_v0 = vld [vmem:[#allocation5 + $0x6b8] sm:$0xff] }
 0x308   :  { %1161 = vmatpush1.msra.mxu1 %v814_v1  ;;  %1238 = vmatpush1.msra.mxu0 %v816_v14  ;;  %v950_v1 = vld [vmem:[#allocation5 + $0x6a0] sm:$0xff]  ;;  %v952_v14 = vld [vmem:[#allocation5 + $0x6b0] sm:$0xff] }
 0x309   :  { %1162 = vmatprep.subr.mxu1 %v807_v17  ;;  %1239 = vmatprep.subr.mxu0 %v809_v18  ;;  %v943_v17 = vld [vmem:[#allocation5 + $0x668] sm:$0xff]  ;;  %v945_v18 = vld [vmem:[#allocation5 + $0x678] sm:$0xff] }
 0x30a   :  { %1163 = vmatpush1.msra.mxu1 %v806_v19  ;;  %1240 = vmatpush1.msra.mxu0 %v808_v20  ;;  %v942_v19 = vld [vmem:[#allocation5 + $0x660] sm:$0xff]  ;;  %v944_v20 = vld [vmem:[#allocation5 + $0x670] sm:$0xff] }
 0x30b   :  { %1164 = vmatprep.subr.mxu1 %v799_v21  ;;  %1241 = vmatprep.subr.mxu0 %v801_v22  ;;  %v935_v21 = vld [vmem:[#allocation5 + $0x628] sm:$0xff]  ;;  %v937_v22 = vld [vmem:[#allocation5 + $0x638] sm:$0xff] }
 0x30c   :  { %1165 = vmatpush1.msra.mxu1 %v798_v23  ;;  %1242 = vmatpush1.msra.mxu0 %v800_v24  ;;  %v934_v23 = vld [vmem:[#allocation5 + $0x620] sm:$0xff]  ;;  %v936_v24 = vld [vmem:[#allocation5 + $0x630] sm:$0xff] }
 0x30d   :  { %1166 = vmatprep.subr.mxu1 %v791_v25  ;;  %1243 = vmatprep.subr.mxu0 %v793_v26  ;;  %v927_v25 = vld [vmem:[#allocation5 + $0x5e8] sm:$0xff]  ;;  %v929_v26 = vld [vmem:[#allocation5 + $0x5f8] sm:$0xff] }
 0x30e   :  { %1167 = vmatpush1.msra.mxu1 %v790_v27  ;;  %1244 = vmatpush1.msra.mxu0 %v792_v9  ;;  %v926_v27 = vld [vmem:[#allocation5 + $0x5e0] sm:$0xff]  ;;  %v928_v9 = vld [vmem:[#allocation5 + $0x5f0] sm:$0xff] }
 0x30f   :  { %1168 = vmatprep.subr.mxu1 %v783_v10  ;;  %1245 = vmatprep.subr.mxu0 %v785_v28  ;;  %v919_v10 = vld [vmem:[#allocation5 + $0x5a8] sm:$0xff]  ;;  %v921_v28 = vld [vmem:[#allocation5 + $0x5b8] sm:$0xff] }
 0x310   :  { %1169 = vmatpush1.msra.mxu1 %v782_v29  ;;  %1246 = vmatpush1.msra.mxu0 %v784_v30  ;;  %v918_v29 = vld [vmem:[#allocation5 + $0x5a0] sm:$0xff]  ;;  %v920_v30 = vld [vmem:[#allocation5 + $0x5b0] sm:$0xff] }
 0x311   :  { %1170 = vmatprep.subr.mxu1 %v775_v31  ;;  %1247 = vmatprep.subr.mxu0 %v777_v3  ;;  %v911_v31 = vld [vmem:[#allocation5 + $0x568] sm:$0xff]  ;;  %v913_v3 = vld [vmem:[#allocation5 + $0x578] sm:$0xff] }
 0x312   :  { %1171 = vmatpush1.msra.mxu1 %v774_v32  ;;  %1248 = vmatpush1.msra.mxu0 %v776_v33  ;;  %v910_v32 = vld [vmem:[#allocation5 + $0x560] sm:$0xff]  ;;  %v912_v33 = vld [vmem:[#allocation5 + $0x570] sm:$0xff] }
 0x313   :  { %1172 = vmatprep.subr.mxu1 %v767_v34  ;;  %1249 = vmatprep.subr.mxu0 %v769_v35  ;;  %v903_v34 = vld [vmem:[#allocation5 + $0x528] sm:$0xff]  ;;  %v905_v35 = vld [vmem:[#allocation5 + $0x538] sm:$0xff] }
 0x314   :  { %1173 = vmatpush1.msra.mxu1 %v766_v36  ;;  %1250 = vmatpush1.msra.mxu0 %v768_v37  ;;  %v902_v36 = vld [vmem:[#allocation5 + $0x520] sm:$0xff]  ;;  %v904_v37 = vld [vmem:[#allocation5 + $0x530] sm:$0xff] }
 0x315   :  { %1174 = vmatprep.subr.mxu1 %v759_v12  ;;  %1251 = vmatprep.subr.mxu0 %v761_v38  ;;  %v895_v12 = vld [vmem:[#allocation5 + $0x4e8] sm:$0xff]  ;;  %v897_v38 = vld [vmem:[#allocation5 + $0x4f8] sm:$0xff] }
 0x316   :  { %1175 = vmatpush1.msra.mxu1 %v758_v39  ;;  %1252 = vmatpush1.msra.mxu0 %v760_v40  ;;  %v894_v39 = vld [vmem:[#allocation5 + $0x4e0] sm:$0xff]  ;;  %v896_v40 = vld [vmem:[#allocation5 + $0x4f0] sm:$0xff] }
 0x317   :  { %1176 = vmatprep.subr.mxu1 %v751_v41  ;;  %1253 = vmatprep.subr.mxu0 %v753_v42  ;;  %v887_v41 = vld [vmem:[#allocation5 + $0x4a8] sm:$0xff]  ;;  %v889_v42 = vld [vmem:[#allocation5 + $0x4b8] sm:$0xff] }
 0x318   :  { %1177 = vmatpush1.msra.mxu1 %v750_v43  ;;  %1254 = vmatpush1.msra.mxu0 %v752_v16  ;;  %v886_v43 = vld [vmem:[#allocation5 + $0x4a0] sm:$0xff]  ;;  %v888_v16 = vld [vmem:[#allocation5 + $0x4b0] sm:$0xff] }
 0x319   :  { %1178 = vmatprep.subr.mxu1 %v743_v44  ;;  %1255 = vmatprep.subr.mxu0 %v745_v45  ;;  %v879_v44 = vld [vmem:[#allocation5 + $0x468] sm:$0xff]  ;;  %v881_v45 = vld [vmem:[#allocation5 + $0x478] sm:$0xff] }
 0x31a   :  { %1179 = vmatpush1.msra.mxu1 %v742_v46  ;;  %1256 = vmatpush1.msra.mxu0 %v744_v47  ;;  %v878_v46 = vld [vmem:[#allocation5 + $0x460] sm:$0xff]  ;;  %v880_v47 = vld [vmem:[#allocation5 + $0x470] sm:$0xff] }
 0x31b   :  { %1180 = vmatprep.subr.mxu1 %v991_v48  ;;  %1257 = vmatprep.subr.mxu0 %v993_v49  ;;  %v871_v48 = vld [vmem:[#allocation5 + $0x428] sm:$0xff]  ;;  %v873_v49 = vld [vmem:[#allocation5 + $0x438] sm:$0xff] }
 0x31c   :  { %1181 = vmatpush2.msra.mxu1 %v990_v50  ;;  %1258 = vmatpush2.msra.mxu0 %v992_v51  ;;  %v870_v50 = vld [vmem:[#allocation5 + $0x420] sm:$0xff]  ;;  %v872_v51 = vld [vmem:[#allocation5 + $0x430] sm:$0xff] }
 0x31d   :  { %1182 = vmatprep.subr.mxu1 %v983_v52  ;;  %1259 = vmatprep.subr.mxu0 %v985_v55 }
 0x31e   :  { %1183 = vmatpush2.msra.mxu1 %v982_v56  ;;  %1260 = vmatpush2.msra.mxu0 %v984_v57 }
 0x31f   :  { %1184 = vmatprep.subr.mxu1 %v975_v58  ;;  %1261 = vmatprep.subr.mxu0 %v977_v59 }
 0x320   :  { %1185 = vmatpush2.msra.mxu1 %v974_v60  ;;  %1262 = vmatpush2.msra.mxu0 %v976_v61 }
 0x321   :  { %1186 = vmatprep.subr.mxu1 %v967_v54  ;;  %1263 = vmatprep.subr.mxu0 %v969_v62 }
 0x322   :  { %1187 = vmatpush2.msra.mxu1 %v966_v53  ;;  %1264 = vmatpush2.msra.mxu0 %v968_v4 }
 0x323   :  { %1188 = vmatprep.subr.mxu1 %v959_v5  ;;  %1265 = vmatprep.subr.mxu0 %v961_v6 }
 0x324   :  { %1189 = vmatpush2.msra.mxu1 %v958_v7  ;;  %1266 = vmatpush2.msra.mxu0 %v960_v8 }
 0x325   :  { %1190 = vmatprep.subr.mxu1 %v951_v11  ;;  %1267 = vmatprep.subr.mxu0 %v953_v0 }
 0x326   :  { %1191 = vmatpush2.msra.mxu1 %v950_v1  ;;  %1268 = vmatpush2.msra.mxu0 %v952_v14 }
 0x327   :  { %1192 = vmatprep.subr.mxu1 %v943_v17  ;;  %1269 = vmatprep.subr.mxu0 %v945_v18 }
 0x328   :  { %1193 = vmatpush2.msra.mxu1 %v942_v19  ;;  %1270 = vmatpush2.msra.mxu0 %v944_v20 }
 0x329   :  { %1194 = vmatprep.subr.mxu1 %v935_v21  ;;  %1271 = vmatprep.subr.mxu0 %v937_v22 }
 0x32a   :  { %1195 = vmatpush2.msra.mxu1 %v934_v23  ;;  %1272 = vmatpush2.msra.mxu0 %v936_v24 }
 0x32b   :  { %1196 = vmatprep.subr.mxu1 %v927_v25  ;;  %1273 = vmatprep.subr.mxu0 %v929_v26 }
 0x32c   :  { %1197 = vmatpush2.msra.mxu1 %v926_v27  ;;  %1274 = vmatpush2.msra.mxu0 %v928_v9 }
 0x32d   :  { %1198 = vmatprep.subr.mxu1 %v919_v10  ;;  %1275 = vmatprep.subr.mxu0 %v921_v28 }
 0x32e   :  { %1199 = vmatpush2.msra.mxu1 %v918_v29  ;;  %1276 = vmatpush2.msra.mxu0 %v920_v30 }
 0x32f   :  { %1200 = vmatprep.subr.mxu1 %v911_v31  ;;  %1277 = vmatprep.subr.mxu0 %v913_v3 }
 0x330   :  { %1201 = vmatpush2.msra.mxu1 %v910_v32  ;;  %1278 = vmatpush2.msra.mxu0 %v912_v33 }
 0x331   :  { %1202 = vmatprep.subr.mxu1 %v903_v34  ;;  %1279 = vmatprep.subr.mxu0 %v905_v35 }
 0x332   :  { %1203 = vmatpush2.msra.mxu1 %v902_v36  ;;  %1280 = vmatpush2.msra.mxu0 %v904_v37 }
 0x333   :  { %1204 = vmatprep.subr.mxu1 %v895_v12  ;;  %1281 = vmatprep.subr.mxu0 %v897_v38 }
 0x334   :  { %1205 = vmatpush2.msra.mxu1 %v894_v39  ;;  %1282 = vmatpush2.msra.mxu0 %v896_v40 }
 0x335   :  { %1206 = vmatprep.subr.mxu1 %v887_v41  ;;  %1283 = vmatprep.subr.mxu0 %v889_v42 }
 0x336   :  { %1207 = vmatpush2.msra.mxu1 %v886_v43  ;;  %1284 = vmatpush2.msra.mxu0 %v888_v16 }
 0x337   :  { %1208 = vmatprep.subr.mxu1 %v879_v44  ;;  %1285 = vmatprep.subr.mxu0 %v881_v45 }
 0x338   :  { %1209 = vmatpush2.msra.mxu1 %v878_v46  ;;  %1286 = vmatpush2.msra.mxu0 %v880_v47 }
 0x339   :  { %1210 = vmatprep.subr.mxu1 %v871_v48  ;;  %1287 = vmatprep.subr.mxu0 %v873_v49 }
 0x33a   :  { %1211 = vmatpush2.msra.mxu1 %v870_v50  ;;  %1288 = vmatpush2.msra.mxu0 %v872_v51 }
 0x33b   :  { %1213 = vmatmul.mubr.f32.vlgmr.msra.gmra.mxu1 %v1793_v15  ;;  %1290 = vmatmul.mubr.f32.vlgmr.msra.gmra.mxu0 %v1793_v15 }
 0x33c   :  { %1218 = vmatprep.mubr.f32.mxu1 %v1798_v63  ;;  %1295 = vmatprep.mubr.f32.mxu0 %v1798_v63 }
 0x33f   :  { %1219 = vmatmul.mubr.f32.gmra.mxu1 %v1801_v2  ;;  %1296 = vmatmul.mubr.f32.gmra.mxu0 %v1801_v2 }
 0x3b8   :  { %v1813_v52 = vpop.f32.mrf.mxu1  ;;  %v1815_v55 = vpop.f32.mrf.mxu0 }
 0x3b9   :  { %v1310_v56 = vrot.slane %v1813_v52, 4  ;;  %v1312_v15 = vrot.slane %v1815_v55, 4 }
 0x3ba   :  { %v1062_v57 = vpop.f32.mrf.mxu1  ;;  %v1819_v59 = vpop.f32.mrf.mxu0 }
 0x3bb   :  { %v1311_v58 = vrot.slane %v1062_v57, 4  ;;  %1326 = vrot.lane.b32.xlu0 %v1310_v56, %s1541_s27  ;;  %v1313_v63 = vrot.slane %v1819_v59, 4 }
 0x3bd   :  { %1328 = vrot.lane.b32.xlu1 %v1311_v58, %s1541_s27 }
 0x3bf   :  { %1330 = vrot.lane.b32.xlu0 %v1312_v15, %s1541_s27 }
 0x3c1   :  { %1332 = vrot.lane.b32.xlu1 %v1313_v63, %s1541_s27 }
 0x3c2   :  { %v1066_v2 = vpop.f32.mrf.mxu1  ;;  %v1143_v60 = vpop.f32.mrf.mxu0 }
 0x3c3   :  { %1358 = vrot.lane.b32.xlu0 %v1066_v2, %s1542_s4  ;;  %v1399_v62 = vrot.slane %v1066_v2, 4  ;;  %v1401_v4 = vrot.slane %v1143_v60, 4 }
 0x3c4   :  { %v1068_v61 = vpop.f32.mrf.mxu1  ;;  %v1145_v54 = vpop.f32.mrf.mxu0 }
 0x3c5   :  { %1360 = vrot.lane.b32.xlu1 %v1068_v61, %s1542_s4  ;;  %v1400_v53 = vrot.slane %v1068_v61, 4  ;;  %v1402_v5 = vrot.slane %v1145_v54, 4 }
 0x3c7   :  { %1362 = vrot.lane.b32.xlu0 %v1143_v60, %s1542_s4 }
 0x3c9   :  { %1364 = vrot.lane.b32.xlu1 %v1145_v54, %s1542_s4 }
 0x3cb   :  { %1415 = vrot.lane.b32.xlu0 %v1399_v62, %s1543_s10 }
 0x3cd   :  { %1417 = vrot.lane.b32.xlu1 %v1400_v53, %s1543_s10 }
 0x3cf   :  { %1419 = vrot.lane.b32.xlu0 %v1401_v4, %s1543_s10 }
 0x3d1   :  { %1421 = vrot.lane.b32.xlu1 %v1402_v5, %s1543_s10 }
 0x3fb   :  { %v1834_v6 = vpop.f32.mrf.mxu1  ;;  %v1836_v7 = vpop.f32.mrf.mxu0 }
 0x3fc   :  { %v1314_v8 = vrot.slane %v1834_v6, 4  ;;  %v1316_v14 = vrot.slane %v1836_v7, 4 }
 0x3fd   :  { %v1839_v11 = vpop.f32.mrf.mxu1  ;;  %v1843_v1 = vpop.f32.mrf.mxu0 }
 0x3fe   :  { %v1315_v0 = vrot.slane %v1839_v11, 4  ;;  %1334 = vrot.lane.b32.xlu0 %v1314_v8, %s1541_s27  ;;  %v1317_v17 = vrot.slane %v1843_v1, 4 }
 0x3ff   :  { %v1220_v18 = vpop.f32.mrf.mxu1  ;;  %v1297_v19 = vpop.f32.mrf.mxu0 }
 0x400   :  { %1336 = vrot.lane.b32.xlu1 %v1315_v0, %s1541_s27  ;;  %v1403_v22 = vrot.slane %v1220_v18, 4  ;;  %v1405_v24 = vrot.slane %v1297_v19, 4 }
 0x401   :  { %v1222_v20 = vpop.f32.mrf.mxu1  ;;  %v1299_v21 = vpop.f32.mrf.mxu0 }
 0x402   :  { %1338 = vrot.lane.b32.xlu0 %v1316_v14, %s1541_s27  ;;  %v1404_v23 = vrot.slane %v1222_v20, 4  ;;  %v1406_v25 = vrot.slane %v1299_v21, 4 }
 0x404   :  { %1340 = vrot.lane.b32.xlu1 %v1317_v17, %s1541_s27 }
 0x406   :  { %1366 = vrot.lane.b32.xlu0 %v1220_v18, %s1542_s4 }
 0x408   :  { %1368 = vrot.lane.b32.xlu1 %v1222_v20, %s1542_s4 }
 0x40a   :  { %1370 = vrot.lane.b32.xlu0 %v1297_v19, %s1542_s4 }
 0x40c   :  { %1372 = vrot.lane.b32.xlu1 %v1299_v21, %s1542_s4 }
 0x40e   :  { %1423 = vrot.lane.b32.xlu0 %v1403_v22, %s1543_s10 }
 0x410   :  { %1425 = vrot.lane.b32.xlu1 %v1404_v23, %s1543_s10 }
 0x412   :  { %1427 = vrot.lane.b32.xlu0 %v1405_v24, %s1543_s10 }
 0x414   :  { %1429 = vrot.lane.b32.xlu1 %v1406_v25, %s1543_s10 }
 0x42d   :  { %v1327_v26 = vpop.permute.xlu0 %1326 }
 0x42f   :  { %v1329_v27 = vpop.permute.xlu1 %1328 }
 0x430   :  { %v1348_v28 = vsel %vm371_vm8, %v1327_v26, %v1329_v27 }
 0x431   :  { %v1331_v9 = vpop.permute.xlu0 %1330  ;;  %v1351_v30 = vadd.f32 %v1348_v28, %v1062_v57 }
 0x432   :  { %v1347_v36 = vsel %vm371_vm8, %v1329_v27, %v1331_v9 }
 0x433   :  { %v1333_v10 = vpop.permute.xlu1 %1332  ;;  %v1352_v41 = vadd.f32 %v1347_v36, %v1815_v55 }
 0x434   :  { %v1346_v37 = vsel %vm371_vm8, %v1331_v9, %v1333_v10 }
 0x435   :  { %v1359_v29 = vpop.permute.xlu0 %1358  ;;  %v1353_v42 = vadd.f32 %v1346_v37, %v1819_v59 }
 0x437   :  { %v1361_v31 = vpop.permute.xlu1 %1360 }
 0x438   :  { %v1381_v3 = vsel %vm1374_vm3, %v1359_v29, %v1361_v31 }
 0x439   :  { %v1384_v32 = vadd.f32 %v1381_v3, %v1351_v30  ;;  %v1363_v33 = vpop.permute.xlu0 %1362 }
 0x43a   :  { %v1380_v38 = vsel %vm1374_vm3, %v1361_v31, %v1363_v33 }
 0x43b   :  { %v1365_v34 = vpop.permute.xlu1 %1364  ;;  %v1385_v45 = vadd.f32 %v1380_v38, %v1352_v41 }
 0x43c   :  { %v1379_v39 = vsel %vm1374_vm3, %v1363_v33, %v1365_v34 }
 0x43d   :  { %v1416_v35 = vpop.permute.xlu0 %1415  ;;  %v1386_v46 = vadd.f32 %v1379_v39, %v1353_v42 }
 0x43f   :  { %v1418_v12 = vpop.permute.xlu1 %1417 }
 0x440   :  { %v1438_v40 = vsel %vm1431_vm4, %v1416_v35, %v1418_v12 }
 0x441   :  { %v1441_v43 = vadd.f32 %v1438_v40, %v1384_v32  ;;  %v1420_v16 = vpop.permute.xlu0 %1419 }
 0x442   :  { %v1437_v44 = vsel %vm1431_vm4, %v1418_v12, %v1420_v16 }
 0x443   :  { %v1422_v47 = vpop.permute.xlu1 %1421  ;;  %v1442_v49 = vadd.f32 %v1437_v44, %v1385_v45 }
 0x444   :  { %v1436_v48 = vsel %vm1431_vm4, %v1420_v16, %v1422_v47 }
 0x445   :  { %v1443_v50 = vadd.f32 %v1436_v48, %v1386_v46 }
 0x447   :  { %v1457_v51 = vcombine.low %v1442_v49, %v1443_v50 }
 0x449   :  { %1465 = vst [vmem:[%s1934_s7 + $0x8] sm:$0xff] %v1457_v51 }
 0x470   :  { %v1335_v55 = vpop.permute.xlu0 %1334 }
 0x471   :  { %v1345_v58 = vsel %vm371_vm8, %v1333_v10, %v1335_v55 }
 0x472   :  { %v1337_v56 = vpop.permute.xlu1 %1336  ;;  %v1354_v15 = vadd.f32 %v1345_v58, %v1834_v6 }
 0x473   :  { %v1344_v62 = vsel %vm371_vm8, %v1335_v55, %v1337_v56 }
 0x474   :  { %v1339_v57 = vpop.permute.xlu0 %1338  ;;  %v1355_v8 = vadd.f32 %v1344_v62, %v1839_v11 }
 0x475   :  { %v1343_v4 = vsel %vm371_vm8, %v1337_v56, %v1339_v57 }
 0x476   :  { %v1341_v59 = vpop.permute.xlu1 %1340  ;;  %v1356_v18 = vadd.f32 %v1343_v4, %v1836_v7 }
 0x477   :  { %v1342_v0 = vsel %vm371_vm8, %v1339_v57, %v1341_v59  ;;  %v1349_v14 = vsel %vm371_vm8, %v1341_v59, %v1327_v26 }
 0x478   :  { %v1367_v63 = vpop.permute.xlu0 %1366  ;;  %v1350_v24 = vadd.f32 %v1349_v14, %v1813_v52  ;;  %v1357_v25 = vadd.f32 %v1342_v0, %v1843_v1 }
 0x479   :  { %v1378_v2 = vsel %vm1374_vm3, %v1365_v34, %v1367_v63 }
 0x47a   :  { %v1387_v60 = vadd.f32 %v1378_v2, %v1354_v15  ;;  %v1369_v61 = vpop.permute.xlu1 %1368 }
 0x47b   :  { %v1377_v5 = vsel %vm1374_vm3, %v1367_v63, %v1369_v61 }
 0x47c   :  { %v1371_v54 = vpop.permute.xlu0 %1370  ;;  %v1388_v19 = vadd.f32 %v1377_v5, %v1355_v8 }
 0x47d   :  { %v1376_v21 = vsel %vm1374_vm3, %v1369_v61, %v1371_v54 }
 0x47e   :  { %v1373_v53 = vpop.permute.xlu1 %1372  ;;  %v1389_v10 = vadd.f32 %v1376_v21, %v1356_v18 }
 0x47f   :  { %v1375_v11 = vsel %vm1374_vm3, %v1371_v54, %v1373_v53  ;;  %v1382_v22 = vsel %vm1374_vm3, %v1373_v53, %v1359_v29 }
 0x480   :  { %v1424_v6 = vpop.permute.xlu0 %1423  ;;  %v1383_v28 = vadd.f32 %v1382_v22, %v1350_v24  ;;  %v1390_v30 = vadd.f32 %v1375_v11, %v1357_v25 }
 0x481   :  { %v1435_v17 = vsel %vm1431_vm4, %v1422_v47, %v1424_v6 }
 0x482   :  { %v1426_v20 = vpop.permute.xlu1 %1425  ;;  %v1444_v26 = vadd.f32 %v1435_v17, %v1387_v60 }
 0x483   :  { %v1434_v23 = vsel %vm1431_vm4, %v1424_v6, %v1426_v20 }
 0x484   :  { %v1445_v7 = vadd.f32 %v1434_v23, %v1388_v19  ;;  %v1428_v27 = vpop.permute.xlu0 %1427 }
 0x485   :  { %v1433_v9 = vsel %vm1431_vm4, %v1426_v20, %v1428_v27 }
 0x486   :  { %v1458_v31 = vcombine.low %v1444_v26, %v1445_v7  ;;  %v1430_v3 = vpop.permute.xlu1 %1429  ;;  %v1446_v52 = vadd.f32 %v1433_v9, %v1389_v10 }
 0x487   :  { %v1432_v29 = vsel %vm1431_vm4, %v1428_v27, %v1430_v3  ;;  %v1439_v32 = vsel %vm1431_vm4, %v1430_v3, %v1416_v35 }
 0x488   :  { %1466 = vst [vmem:[%s1934_s7 + $0x10] sm:$0xff] %v1458_v31  ;;  %v1440_v1 = vadd.f32 %v1439_v32, %v1383_v28  ;;  %v1447_v33 = vadd.f32 %v1432_v29, %v1390_v30 }
 0x48a   :  { %v1456_v34 = vcombine.low %v1440_v1, %v1441_v43  ;;  %v1459_v36 = vcombine.low %v1446_v52, %v1447_v33 }
 0x48c   :  { %1464 = vst [vmem:[%s1934_s7] sm:$0xff] %v1456_v34  ;;  %1467 = vst [vmem:[%s1934_s7 + $0x18] sm:$0xff] %v1459_v36 }
 0x48d   :  { %1472 = vsyncpa [#allocation3], 1 }
 0x48e   :  { %1473 = vsyncpa [#allocation4], 1 }

</bundles_post_ra>
